<compile_context>
chip_gen: v5e
topology: v5e:2x2
jax: 0.10.0
libtpu: 0.0.40
codegen_flags: <defaults>
</compile_context>

<pallas_src>
import functools

import numpy as np
import jax
import jax.numpy as jnp
from jax.experimental import pallas as pl
from jax.experimental.pallas import tpu as pltpu

LN_EPS = 1e-5
INV_SQRT2 = float(1.0 / np.sqrt(2.0))


def _vmem_limit_bytes():
    """Per-chip scoped-VMEM request (leave headroom), with a safe fallback."""
    try:
        info = pltpu.get_tpu_info()
        cap = getattr(info, "vmem_capacity_bytes", None)
        if cap:
            return int(min(cap * 7 // 8, 112 * 1024 * 1024))
    except Exception:
        pass
    return 32 * 1024 * 1024  # known-safe fallback


def _layernorm(x, w, b):
    # x: (M, D) f32, w/b: (1, D) f32
    mu = jnp.mean(x, axis=-1, keepdims=True)
    var = jnp.mean((x - mu) ** 2, axis=-1, keepdims=True)
    return (x - mu) * jax.lax.rsqrt(var + LN_EPS) * w + b


def _gelu_exact(x):
    # torch nn.GELU() default (erf-based, exact)
    return 0.5 * x * (1.0 + jax.lax.erf(x * INV_SQRT2))


def _project_heads(x_n, w_ref, heads, dim_head, cdt, scale=None):
    """(M, D) f32 x (inner, D) weight -> (heads, M, dim_head) in cdt (bf16)."""
    y = jax.lax.dot_general(x_n.astype(cdt), w_ref[...],
                            (((1,), (1,)), ((), ())),
                            preferred_element_type=jnp.float32)      # (M, inner)
    if scale is not None:
        y = y * scale                       # fold attention scale into q (tiny tensor)
    y = y.reshape(x_n.shape[0], heads, dim_head)                     # m (h d) -> m h d
    y = jnp.swapaxes(y, 0, 1)                                        # (h, M, d) f32 relayout
    return y.astype(cdt)                                             # bf16 until the matmuls


def _attn_ff(xq, q, k, v, wo_ref, bo_ref, ln2w_ref, ln2b_ref,
             w1_ref, b1_ref, w2_ref, b2_ref, o_ref, cdt):
    """Attention core + residual + FeedForward + residual for one q tile."""
    f32 = jnp.float32

    # scores: head-batched 'hnd,hmd->hnm' (scale already folded into q)
    dots = jax.lax.dot_general(q, k, (((2,), (2,)), ((0,), (0,))),
                               preferred_element_type=f32)            # (h, tq, N)
    e = jnp.exp(dots - jnp.max(dots, axis=-1, keepdims=True))         # un-normalized probs
    rowsum = jnp.sum(e, axis=-1, keepdims=True)                       # (h, tq, 1)

    # PV on the un-normalized probs, normalize the (small) context afterwards.
    ctx = jax.lax.dot_general(e.astype(cdt), v, (((2,), (1,)), ((0,), (0,))),
                              preferred_element_type=f32)             # (h, tq, dh)
    ctx = ctx * pl.reciprocal(rowsum, approx=True)

    # output projection: per-head ctx_h @ Wout_h summed over heads (no concat)
    proj = jax.lax.dot_general(ctx.astype(cdt), wo_ref[...],
                               (((2,), (1,)), ((0,), (0,))),
                               preferred_element_type=f32)            # (h, tq, D)
    x1 = xq + jnp.sum(proj, axis=0) + bo_ref[...]                     # residual 1

    # feedforward
    x1n = _layernorm(x1, ln2w_ref[...], ln2b_ref[...])
    h = jax.lax.dot_general(x1n.astype(cdt), w1_ref[...],
                            (((1,), (1,)), ((), ())),
                            preferred_element_type=f32) + b1_ref[...]
    h = _gelu_exact(h)
    y = jax.lax.dot_general(h.astype(cdt), w2_ref[...],
                            (((1,), (1,)), ((), ())),
                            preferred_element_type=f32) + b2_ref[...]
    o_ref[0] = (x1 + y).astype(o_ref.dtype)                           # residual 2


# ---------------------------------------------------------------------------
# Layer kernel, full-sequence variant (tq == N): single x ref for Q and K/V.
# ---------------------------------------------------------------------------
def layer_kernel_full(x_ref, ln1w_ref, ln1b_ref, wq_ref, wk_ref, wv_ref,
                      wo_ref, bo_ref, ln2w_ref, ln2b_ref, w1_ref, b1_ref,
                      w2_ref, b2_ref, o_ref, *, heads, dim_head, scale):
    f32 = jnp.float32
    cdt = wq_ref.dtype
    x = x_ref[0].astype(f32)                                          # (N, D)
    xn = _layernorm(x, ln1w_ref[...], ln1b_ref[...])
    q = _project_heads(xn, wq_ref, heads, dim_head, cdt, scale=scale)
    k = _project_heads(xn, wk_ref, heads, dim_head, cdt)
    v = _project_heads(xn, wv_ref, heads, dim_head, cdt)
    _attn_ff(x, q, k, v, wo_ref, bo_ref, ln2w_ref, ln2b_ref,
             w1_ref, b1_ref, w2_ref, b2_ref, o_ref, cdt)


# ---------------------------------------------------------------------------
# Layer kernel, tiled-sequence variant (tq < N): K/V computed once per batch
# into persistent VMEM scratch (seq grid axis is "arbitrary").
# ---------------------------------------------------------------------------
def layer_kernel_tiled(xq_ref, xkv_ref, ln1w_ref, ln1b_ref, wq_ref, wk_ref,
                       wv_ref, wo_ref, bo_ref, ln2w_ref, ln2b_ref, w1_ref,
                       b1_ref, w2_ref, b2_ref, o_ref, k_scr, v_scr,
                       *, heads, dim_head, scale):
    f32 = jnp.float32
    cdt = wq_ref.dtype

    @pl.when(pl.program_id(1) == 0)
    def _():
        xkv_n = _layernorm(xkv_ref[0].astype(f32), ln1w_ref[...], ln1b_ref[...])
        k_scr[...] = _project_heads(xkv_n, wk_ref, heads, dim_head, cdt)
        v_scr[...] = _project_heads(xkv_n, wv_ref, heads, dim_head, cdt)

    xq = xq_ref[0].astype(f32)                                        # (tq, D)
    xq_n = _layernorm(xq, ln1w_ref[...], ln1b_ref[...])
    q = _project_heads(xq_n, wq_ref, heads, dim_head, cdt, scale=scale)
    _attn_ff(xq, q, k_scr[...], v_scr[...], wo_ref, bo_ref, ln2w_ref, ln2b_ref,
             w1_ref, b1_ref, w2_ref, b2_ref, o_ref, cdt)


# ---------------------------------------------------------------------------
# Final LayerNorm kernel (rows flattened to (B*N, D))
# ---------------------------------------------------------------------------
def final_norm_kernel(x_ref, w_ref, b_ref, o_ref):
    o_ref[...] = _layernorm(x_ref[...].astype(jnp.float32),
                            w_ref[...], b_ref[...]).astype(o_ref.dtype)


# ---------------------------------------------------------------------------
# Wrappers
# ---------------------------------------------------------------------------
def _seq_tile(n, vmem_limit):
    # v7x (64 MiB VMEM) -> cap q tiles at 256; v5e/v6e keep 512 to feed the MXU.
    max_t = 512 if vmem_limit > 64 * 1024 * 1024 else 256
    if n <= max_t:
        return n
    for t in (max_t, 256, 128):
        if t < n and n % t == 0:
            return t
    return n
    # NOTE: when B == 1 and tq == N on v7x only one of the 2 TensorCores is
    # used; shrink tq (and keep the seq axis "parallel") if that case matters.


def fused_layer(x, p, heads, dim_head, vmem_limit, seq_tile=None):
    B, N, D = x.shape
    inner = heads * dim_head
    Hd = p["w1"].shape[0]
    tq = seq_tile if seq_tile is not None else _seq_tile(N, vmem_limit)
    assert N % tq == 0 and (tq == N or tq % 8 == 0)
    n_tiles = N // tq

    # host-side weight prep (no in-kernel transposes / lane slicing)
    wq, wk, wv = jnp.split(p["w_qkv"], 3, axis=0)          # each (inner, D)
    wo_h = p["w_out"].T.reshape(heads, dim_head, D)        # (heads, dh, D)

    scale = float(dim_head) ** -0.5

    def _w(shape):  # broadcast (weight) operand: same block every grid step
        return pl.BlockSpec(shape, lambda *args, _s=len(shape): (0,) * _s)

    weight_specs = [
        _w((1, D)), _w((1, D)),                            # LN1 w, b
        _w((inner, D)), _w((inner, D)), _w((inner, D)),    # Wq, Wk, Wv
        _w((heads, dim_head, D)),                          # Wout (head-split)
        _w((1, D)),                                        # b_out
        _w((1, D)), _w((1, D)),                            # LN2 w, b
        _w((Hd, D)), _w((1, Hd)),                          # W1, b1
        _w((D, Hd)), _w((1, D)),                           # W2, b2
    ]
    weight_args = (p["ln1_w"], p["ln1_b"], wq, wk, wv, wo_h, p["b_out"],
                   p["ln2_w"], p["ln2_b"], p["w1"], p["b1"], p["w2"], p["b2"])

    w_bytes = p["w_qkv"].dtype.itemsize
    flops = int(B * (2 * N * D * 3 * inner              # qkv projections (once per batch)
                     + 4 * heads * N * N * dim_head     # scores + PV
                     + 2 * N * inner * D                # output projection
                     + 4 * N * D * Hd))                 # feedforward
    transcend = int(B * (heads * N * N + N * Hd))
    bytes_acc = int((2 if n_tiles == 1 else 3) * B * N * D * x.dtype.itemsize
                    + (4 * inner * D + 2 * D * Hd) * w_bytes)
    ce = pl.CostEstimate(flops=flops, transcendentals=transcend,
                         bytes_accessed=bytes_acc)

    if n_tiles == 1:
        kernel = functools.partial(layer_kernel_full, heads=heads,
                                   dim_head=dim_head, scale=scale)
        return pl.pallas_call(
            kernel,
            out_shape=jax.ShapeDtypeStruct((B, N, D), x.dtype),
            grid=(B,),
            in_specs=[pl.BlockSpec((1, N, D), lambda b: (b, 0, 0))] + weight_specs,
            out_specs=pl.BlockSpec((1, N, D), lambda b: (b, 0, 0)),
            compiler_params=pltpu.CompilerParams(
                dimension_semantics=("parallel",),
                vmem_limit_bytes=vmem_limit),
            cost_estimate=ce,
        )(x, *weight_args)

    kernel = functools.partial(layer_kernel_tiled, heads=heads,
                               dim_head=dim_head, scale=scale)
    return pl.pallas_call(
        kernel,
        out_shape=jax.ShapeDtypeStruct((B, N, D), x.dtype),
        grid=(B, n_tiles),
        in_specs=[pl.BlockSpec((1, tq, D), lambda b, n: (b, n, 0)),   # Q / residual rows
                  pl.BlockSpec((1, N, D), lambda b, n: (b, 0, 0)),    # full seq (K/V, once per b)
                  ] + weight_specs,
        out_specs=pl.BlockSpec((1, tq, D), lambda b, n: (b, n, 0)),
        scratch_shapes=[pltpu.VMEM((heads, N, dim_head), p["w_qkv"].dtype),  # K (bf16)
                        pltpu.VMEM((heads, N, dim_head), p["w_qkv"].dtype)], # V (bf16)
        compiler_params=pltpu.CompilerParams(
            dimension_semantics=("parallel", "arbitrary"),
            vmem_limit_bytes=vmem_limit),
        cost_estimate=ce,
    )(x, x, *weight_args)


def final_norm(x, p, vmem_limit):
    B, N, D = x.shape
    M = B * N
    xf = x.reshape(M, D)
    tm = M
    if M > 1024:
        for t in (1024, 512, 256, 128):
            if M % t == 0:
                tm = t
                break
    out = pl.pallas_call(
        final_norm_kernel,
        out_shape=jax.ShapeDtypeStruct((M, D), jnp.float32),
        grid=(M // tm,),
        in_specs=[pl.BlockSpec((tm, D), lambda i: (i, 0)),
                  pl.BlockSpec((1, D), lambda i: (0, 0)),
                  pl.BlockSpec((1, D), lambda i: (0, 0))],
        out_specs=pl.BlockSpec((tm, D), lambda i: (i, 0)),
        compiler_params=pltpu.CompilerParams(
            dimension_semantics=("parallel",),
            vmem_limit_bytes=vmem_limit),
    )(xf, p["ln_w"], p["ln_b"])
    return out.reshape(B, N, D)


def transformer_forward(x, params, heads, dim_head, seq_tile=None):
    vmem_limit = _vmem_limit_bytes()
    for layer in params["layers"]:
        x = fused_layer(x, layer, heads, dim_head, vmem_limit, seq_tile=seq_tile)
    return final_norm(x, params["final_norm"], vmem_limit)


# ---------------------------------------------------------------------------
# Deterministic parameter init (synthetic weights, matching module shapes)
# ---------------------------------------------------------------------------
def init_params(key, dim, depth, heads, dim_head, mlp_dim, dtype=jnp.bfloat16):
    inner = heads * dim_head
    layers = []
    for _ in range(depth):
        key, k1, k2, k3, k4, k5, k6 = jax.random.split(key, 7)
        layers.append({
            "ln1_w": jnp.ones((1, dim), jnp.float32),
            "ln1_b": jnp.zeros((1, dim), jnp.float32),
            "w_qkv": (0.05 * jax.random.normal(k1, (3 * inner, dim), jnp.float32)).astype(dtype),
            "w_out": (0.05 * jax.random.normal(k2, (dim, inner), jnp.float32)).astype(dtype),
            "b_out": 0.05 * jax.random.normal(k3, (1, dim), jnp.float32),
            "ln2_w": jnp.ones((1, dim), jnp.float32),
            "ln2_b": jnp.zeros((1, dim), jnp.float32),
            "w1": (0.05 * jax.random.normal(k4, (mlp_dim, dim), jnp.float32)).astype(dtype),
            "b1": 0.05 * jax.random.normal(k5, (1, mlp_dim), jnp.float32),
            "w2": (0.05 * jax.random.normal(k6, (dim, mlp_dim), jnp.float32)).astype(dtype),
            "b2": jnp.zeros((1, dim), jnp.float32),
        })
    return {"layers": layers,
            "final_norm": {"ln_w": jnp.ones((1, dim), jnp.float32),
                           "ln_b": jnp.zeros((1, dim), jnp.float32)}}


# ---------------------------------------------------------------------------
# Pure-JAX reference with matching mixed precision (bf16 matmuls, f32 accum).
# NOTE: the kernel uses pl.reciprocal(approx=True) and normalizes after PV on
# bf16 exp values; this deviates from a float32 softmax at the ~1e-2 level.
# ---------------------------------------------------------------------------
def reference_forward(x, params, heads, dim_head):
    f32 = jnp.float32
    act_dtype = x.dtype

    def ln(t, w, b):
        mu = jnp.mean(t, -1, keepdims=True)
        var = jnp.mean((t - mu) ** 2, -1, keepdims=True)
        return (t - mu) * jax.lax.rsqrt(var + LN_EPS) * w + b

    B, N, D = x.shape
    inner = heads * dim_head
    scale = float(dim_head) ** -0.5
    x = x.astype(f32)
    for p in params["layers"]:
        cdt = p["w_qkv"].dtype
        xn = ln(x, p["ln1_w"], p["ln1_b"])
        qkv = jnp.dot(xn.astype(cdt), p["w_qkv"].T, preferred_element_type=f32)
        q, k, v = jnp.split(qkv, 3, axis=-1)

        def sh(t):
            return t.reshape(B, N, heads, dim_head).transpose(0, 2, 1, 3)
        q, k, v = map(sh, (q, k, v))
        dots = jnp.einsum("bhnd,bhmd->bhnm", q.astype(cdt), k.astype(cdt),
                          preferred_element_type=f32) * scale
        attn = jax.nn.softmax(dots, axis=-1)
        ctx = jnp.einsum("bhnm,bhmd->bhnd", attn.astype(cdt), v.astype(cdt),
                         preferred_element_type=f32)
        ctx = ctx.transpose(0, 2, 1, 3).reshape(B, N, inner)
        x = jnp.dot(ctx.astype(cdt), p["w_out"].T, preferred_element_type=f32) + p["b_out"] + x

        xn = ln(x, p["ln2_w"], p["ln2_b"])
        h = jnp.dot(xn.astype(cdt), p["w1"].T, preferred_element_type=f32) + p["b1"]
        h = _gelu_exact(h)
        x = jnp.dot(h.astype(cdt), p["w2"].T, preferred_element_type=f32) + p["b2"] + x
        # mirror the kernel's bf16 residual-stream store at layer output
        x = x.astype(act_dtype).astype(f32)
    fn = params["final_norm"]
    return ln(x, fn["ln_w"], fn["ln_b"])


if __name__ == "__main__":
    # NOTE: production dims should keep D/Hd multiples of 128 and tq multiples
    # of 16; these tiny shapes are functional tests only.
    B, N, D = 2, 8, 32
    HEADS, DIM_HEAD, MLP_DIM, DEPTH = 4, 16, 64, 2

    key = jax.random.PRNGKey(0)
    kx, kp, kx2, kp2 = jax.random.split(key, 4)

    # --- Test 1: full-sequence (tq == N) fused layer path -------------------
    x = jax.random.normal(kx, (B, N, D), jnp.float32).astype(jnp.bfloat16)
    params = init_params(kp, D, DEPTH, HEADS, DIM_HEAD, MLP_DIM, dtype=jnp.bfloat16)

    fwd = jax.jit(functools.partial(transformer_forward, heads=HEADS, dim_head=DIM_HEAD))
    out = jax.block_until_ready(fwd(x, params))
    ref = jax.block_until_ready(reference_forward(x, params, HEADS, DIM_HEAD))
    assert out.shape == (B, N, D)
    np.testing.assert_allclose(np.asarray(out, np.float32),
                               np.asarray(ref, np.float32),
                               rtol=2e-2, atol=2e-2)

    # --- Test 2: tiled-sequence path (K/V once per batch into VMEM scratch) --
    B2, N2 = 1, 32
    x2 = jax.random.normal(kx2, (B2, N2, D), jnp.float32).astype(jnp.bfloat16)
    params2 = init_params(kp2, D, DEPTH, HEADS, DIM_HEAD, MLP_DIM, dtype=jnp.bfloat16)
    fwd2 = jax.jit(functools.partial(transformer_forward, heads=HEADS,
                                     dim_head=DIM_HEAD, seq_tile=16))
    out2 = jax.block_until_ready(fwd2(x2, params2))
    ref2 = jax.block_until_ready(reference_forward(x2, params2, HEADS, DIM_HEAD))
    np.testing.assert_allclose(np.asarray(out2, np.float32),
                               np.asarray(ref2, np.float32),
                               rtol=2e-2, atol=2e-2)

    print("KERNEL_OK")
</pallas_src>

<mosaic_0001>
module attributes {stable_mosaic.version = 11 : i64} {
  func.func @layer_kernel_full(%arg0: i32, %arg1: memref<1x8x32xbf16, #tpu.memory_space<vmem>>, %arg2: memref<1x32xf32, #tpu.memory_space<vmem>>, %arg3: memref<1x32xf32, #tpu.memory_space<vmem>>, %arg4: memref<64x32xbf16, #tpu.memory_space<vmem>>, %arg5: memref<64x32xbf16, #tpu.memory_space<vmem>>, %arg6: memref<64x32xbf16, #tpu.memory_space<vmem>>, %arg7: memref<4x16x32xbf16, #tpu.memory_space<vmem>>, %arg8: memref<1x32xf32, #tpu.memory_space<vmem>>, %arg9: memref<1x32xf32, #tpu.memory_space<vmem>>, %arg10: memref<1x32xf32, #tpu.memory_space<vmem>>, %arg11: memref<64x32xbf16, #tpu.memory_space<vmem>>, %arg12: memref<1x64xf32, #tpu.memory_space<vmem>>, %arg13: memref<32x64xbf16, #tpu.memory_space<vmem>>, %arg14: memref<1x32xf32, #tpu.memory_space<vmem>>, %arg15: memref<1x8x32xbf16, #tpu.memory_space<vmem>>) attributes {dimension_semantics = [#tpu.dimension_semantics<parallel>], iteration_bounds = array<i64: 2>, scalar_prefetch = 0 : i64, scratch_operands = 0 : i64, tpu.core_type = #tpu.core_type<tc>, window_params = [{transform_indices = @transform_0, window_bounds = array<i64: 1, 8, 32>}, {pipeline_mode = #tpu.pipeline_mode<synchronous>, transform_indices = @transform_1, window_bounds = array<i64: 1, 32>}, {pipeline_mode = #tpu.pipeline_mode<synchronous>, transform_indices = @transform_2, window_bounds = array<i64: 1, 32>}, {pipeline_mode = #tpu.pipeline_mode<synchronous>, transform_indices = @transform_3, window_bounds = array<i64: 64, 32>}, {pipeline_mode = #tpu.pipeline_mode<synchronous>, transform_indices = @transform_4, window_bounds = array<i64: 64, 32>}, {pipeline_mode = #tpu.pipeline_mode<synchronous>, transform_indices = @transform_5, window_bounds = array<i64: 64, 32>}, {pipeline_mode = #tpu.pipeline_mode<synchronous>, transform_indices = @transform_6, window_bounds = array<i64: 4, 16, 32>}, {pipeline_mode = #tpu.pipeline_mode<synchronous>, transform_indices = @transform_7, window_bounds = array<i64: 1, 32>}, {pipeline_mode = #tpu.pipeline_mode<synchronous>, transform_indices = @transform_8, window_bounds = array<i64: 1, 32>}, {pipeline_mode = #tpu.pipeline_mode<synchronous>, transform_indices = @transform_9, window_bounds = array<i64: 1, 32>}, {pipeline_mode = #tpu.pipeline_mode<synchronous>, transform_indices = @transform_10, window_bounds = array<i64: 64, 32>}, {pipeline_mode = #tpu.pipeline_mode<synchronous>, transform_indices = @transform_11, window_bounds = array<i64: 1, 64>}, {pipeline_mode = #tpu.pipeline_mode<synchronous>, transform_indices = @transform_12, window_bounds = array<i64: 32, 64>}, {pipeline_mode = #tpu.pipeline_mode<synchronous>, transform_indices = @transform_13, window_bounds = array<i64: 1, 32>}, {transform_indices = @transform_14, window_bounds = array<i64: 1, 8, 32>}]} {
    %c0 = arith.constant 0 : index
    %c0_0 = arith.constant 0 : index
    %c0_1 = arith.constant 0 : index
    %0 = vector.load %arg1[%c0, %c0_0, %c0_1] : memref<1x8x32xbf16, #tpu.memory_space<vmem>>, vector<1x8x32xbf16>
    %1 = vector.shape_cast %0 : vector<1x8x32xbf16> to vector<8x32xbf16>
    %2 = arith.extf %1 : vector<8x32xbf16> to vector<8x32xf32>
    %c0_2 = arith.constant 0 : index
    %c0_3 = arith.constant 0 : index
    %3 = vector.load %arg2[%c0_2, %c0_3] : memref<1x32xf32, #tpu.memory_space<vmem>>, vector<1x32xf32>
    %c0_4 = arith.constant 0 : index
    %c0_5 = arith.constant 0 : index
    %4 = vector.load %arg3[%c0_4, %c0_5] : memref<1x32xf32, #tpu.memory_space<vmem>>, vector<1x32xf32>
    %cst = arith.constant dense<0.000000e+00> : vector<8xf32>
    %5 = vector.multi_reduction <add>, %2, %cst [1] : vector<8x32xf32> to vector<8xf32>
    %6 = vector.shape_cast %5 : vector<8xf32> to vector<8x1xf32>
    %cst_6 = arith.constant 3.200000e+01 : f32
    %7 = vector.broadcast %cst_6 : f32 to vector<8x1xf32>
    %8 = arith.divf %6, %7 : vector<8x1xf32>
    %9 = vector.broadcast %8 : vector<8x1xf32> to vector<8x32xf32>
    %10 = arith.subf %2, %9 : vector<8x32xf32>
    %11 = arith.mulf %10, %10 : vector<8x32xf32>
    %cst_7 = arith.constant dense<0.000000e+00> : vector<8xf32>
    %12 = vector.multi_reduction <add>, %11, %cst_7 [1] : vector<8x32xf32> to vector<8xf32>
    %13 = vector.shape_cast %12 : vector<8xf32> to vector<8x1xf32>
    %cst_8 = arith.constant 3.200000e+01 : f32
    %14 = vector.broadcast %cst_8 : f32 to vector<8x1xf32>
    %15 = arith.divf %13, %14 : vector<8x1xf32>
    %16 = vector.broadcast %8 : vector<8x1xf32> to vector<8x32xf32>
    %17 = arith.subf %2, %16 : vector<8x32xf32>
    %cst_9 = arith.constant 9.99999974E-6 : f32
    %18 = vector.broadcast %cst_9 : f32 to vector<8x1xf32>
    %19 = arith.addf %15, %18 : vector<8x1xf32>
    %20 = math.rsqrt %19 : vector<8x1xf32>
    %21 = vector.broadcast %20 : vector<8x1xf32> to vector<8x32xf32>
    %22 = arith.mulf %17, %21 : vector<8x32xf32>
    %23 = vector.broadcast %3 : vector<1x32xf32> to vector<8x32xf32>
    %24 = arith.mulf %22, %23 : vector<8x32xf32>
    %25 = vector.broadcast %4 : vector<1x32xf32> to vector<8x32xf32>
    %26 = arith.addf %24, %25 : vector<8x32xf32>
    %27 = arith.truncf %26 : vector<8x32xf32> to vector<8x32xbf16>
    %c0_10 = arith.constant 0 : index
    %c0_11 = arith.constant 0 : index
    %28 = vector.load %arg4[%c0_10, %c0_11] : memref<64x32xbf16, #tpu.memory_space<vmem>>, vector<64x32xbf16>
    %cst_12 = arith.constant dense<0.000000e+00> : vector<8x64xf32>
    %29 = tpu.matmul %27, %28, %cst_12 {dimension_numbers = #tpu.dot_dimension_numbers<[1], [1], [0], [0], [0, 0, 1, 0], [], []>} : vector<8x32xbf16>, vector<64x32xbf16>, vector<8x64xf32> -> vector<8x64xf32>
    %cst_13 = arith.constant 2.500000e-01 : f32
    %30 = vector.broadcast %cst_13 : f32 to vector<8x64xf32>
    %31 = arith.mulf %29, %30 : vector<8x64xf32>
    %32 = vector.shape_cast %31 : vector<8x64xf32> to vector<8x4x16xf32>
    %33 = tpu.transpose %32, [1, 0, 2] : vector<8x4x16xf32> -> vector<4x8x16xf32>
    %34 = arith.truncf %33 : vector<4x8x16xf32> to vector<4x8x16xbf16>
    %35 = arith.truncf %26 : vector<8x32xf32> to vector<8x32xbf16>
    %c0_14 = arith.constant 0 : index
    %c0_15 = arith.constant 0 : index
    %36 = vector.load %arg5[%c0_14, %c0_15] : memref<64x32xbf16, #tpu.memory_space<vmem>>, vector<64x32xbf16>
    %cst_16 = arith.constant dense<0.000000e+00> : vector<8x64xf32>
    %37 = tpu.matmul %35, %36, %cst_16 {dimension_numbers = #tpu.dot_dimension_numbers<[1], [1], [0], [0], [0, 0, 1, 0], [], []>} : vector<8x32xbf16>, vector<64x32xbf16>, vector<8x64xf32> -> vector<8x64xf32>
    %38 = vector.shape_cast %37 : vector<8x64xf32> to vector<8x4x16xf32>
    %39 = tpu.transpose %38, [1, 0, 2] : vector<8x4x16xf32> -> vector<4x8x16xf32>
    %40 = arith.truncf %39 : vector<4x8x16xf32> to vector<4x8x16xbf16>
    %41 = arith.truncf %26 : vector<8x32xf32> to vector<8x32xbf16>
    %c0_17 = arith.constant 0 : index
    %c0_18 = arith.constant 0 : index
    %42 = vector.load %arg6[%c0_17, %c0_18] : memref<64x32xbf16, #tpu.memory_space<vmem>>, vector<64x32xbf16>
    %cst_19 = arith.constant dense<0.000000e+00> : vector<8x64xf32>
    %43 = tpu.matmul %41, %42, %cst_19 {dimension_numbers = #tpu.dot_dimension_numbers<[1], [1], [0], [0], [0, 0, 1, 0], [], []>} : vector<8x32xbf16>, vector<64x32xbf16>, vector<8x64xf32> -> vector<8x64xf32>
    %44 = vector.shape_cast %43 : vector<8x64xf32> to vector<8x4x16xf32>
    %45 = tpu.transpose %44, [1, 0, 2] : vector<8x4x16xf32> -> vector<4x8x16xf32>
    %46 = arith.truncf %45 : vector<4x8x16xf32> to vector<4x8x16xbf16>
    %cst_20 = arith.constant dense<0.000000e+00> : vector<4x8x8xf32>
    %47 = tpu.matmul %34, %40, %cst_20 {dimension_numbers = #tpu.dot_dimension_numbers<[2], [2], [1], [1], [0, 0, 0, 1, 1, 1], [0], [0]>} : vector<4x8x16xbf16>, vector<4x8x16xbf16>, vector<4x8x8xf32> -> vector<4x8x8xf32>
    %cst_21 = arith.constant dense<0xFF800000> : vector<4x8xf32>
    %48 = vector.multi_reduction <maximumf>, %47, %cst_21 [2] : vector<4x8x8xf32> to vector<4x8xf32>
    %49 = vector.shape_cast %48 : vector<4x8xf32> to vector<4x8x1xf32>
    %50 = vector.broadcast %49 : vector<4x8x1xf32> to vector<4x8x8xf32>
    %51 = arith.subf %47, %50 : vector<4x8x8xf32>
    %52 = math.exp %51 : vector<4x8x8xf32>
    %cst_22 = arith.constant dense<0.000000e+00> : vector<4x8xf32>
    %53 = vector.multi_reduction <add>, %52, %cst_22 [2] : vector<4x8x8xf32> to vector<4x8xf32>
    %54 = vector.shape_cast %53 : vector<4x8xf32> to vector<4x8x1xf32>
    %55 = arith.truncf %52 : vector<4x8x8xf32> to vector<4x8x8xbf16>
    %cst_23 = arith.constant dense<0.000000e+00> : vector<4x8x16xf32>
    %56 = tpu.matmul %55, %46, %cst_23 {dimension_numbers = #tpu.dot_dimension_numbers<[2], [1], [1], [2], [0, 0, 0, 1, 1, 2], [0], [0]>} : vector<4x8x8xbf16>, vector<4x8x16xbf16>, vector<4x8x16xf32> -> vector<4x8x16xf32>
    %57 = tpu.reciprocal %54 {approx = true} : vector<4x8x1xf32> -> vector<4x8x1xf32>
    %58 = vector.broadcast %57 : vector<4x8x1xf32> to vector<4x8x16xf32>
    %59 = arith.mulf %56, %58 : vector<4x8x16xf32>
    %60 = arith.truncf %59 : vector<4x8x16xf32> to vector<4x8x16xbf16>
    %c0_24 = arith.constant 0 : index
    %c0_25 = arith.constant 0 : index
    %c0_26 = arith.constant 0 : index
    %61 = vector.load %arg7[%c0_24, %c0_25, %c0_26] : memref<4x16x32xbf16, #tpu.memory_space<vmem>>, vector<4x16x32xbf16>
    %cst_27 = arith.constant dense<0.000000e+00> : vector<4x8x32xf32>
    %62 = tpu.matmul %60, %61, %cst_27 {dimension_numbers = #tpu.dot_dimension_numbers<[2], [1], [1], [2], [0, 0, 0, 1, 1, 2], [0], [0]>} : vector<4x8x16xbf16>, vector<4x16x32xbf16>, vector<4x8x32xf32> -> vector<4x8x32xf32>
    %cst_28 = arith.constant dense<0.000000e+00> : vector<8x32xf32>
    %63 = vector.multi_reduction <add>, %62, %cst_28 [0] : vector<4x8x32xf32> to vector<8x32xf32>
    %64 = arith.addf %2, %63 : vector<8x32xf32>
    %c0_29 = arith.constant 0 : index
    %c0_30 = arith.constant 0 : index
    %65 = vector.load %arg8[%c0_29, %c0_30] : memref<1x32xf32, #tpu.memory_space<vmem>>, vector<1x32xf32>
    %66 = vector.broadcast %65 : vector<1x32xf32> to vector<8x32xf32>
    %67 = arith.addf %64, %66 : vector<8x32xf32>
    %c0_31 = arith.constant 0 : index
    %c0_32 = arith.constant 0 : index
    %68 = vector.load %arg9[%c0_31, %c0_32] : memref<1x32xf32, #tpu.memory_space<vmem>>, vector<1x32xf32>
    %c0_33 = arith.constant 0 : index
    %c0_34 = arith.constant 0 : index
    %69 = vector.load %arg10[%c0_33, %c0_34] : memref<1x32xf32, #tpu.memory_space<vmem>>, vector<1x32xf32>
    %cst_35 = arith.constant dense<0.000000e+00> : vector<8xf32>
    %70 = vector.multi_reduction <add>, %67, %cst_35 [1] : vector<8x32xf32> to vector<8xf32>
    %71 = vector.shape_cast %70 : vector<8xf32> to vector<8x1xf32>
    %cst_36 = arith.constant 3.200000e+01 : f32
    %72 = vector.broadcast %cst_36 : f32 to vector<8x1xf32>
    %73 = arith.divf %71, %72 : vector<8x1xf32>
    %74 = vector.broadcast %73 : vector<8x1xf32> to vector<8x32xf32>
    %75 = arith.subf %67, %74 : vector<8x32xf32>
    %76 = arith.mulf %75, %75 : vector<8x32xf32>
    %cst_37 = arith.constant dense<0.000000e+00> : vector<8xf32>
    %77 = vector.multi_reduction <add>, %76, %cst_37 [1] : vector<8x32xf32> to vector<8xf32>
    %78 = vector.shape_cast %77 : vector<8xf32> to vector<8x1xf32>
    %cst_38 = arith.constant 3.200000e+01 : f32
    %79 = vector.broadcast %cst_38 : f32 to vector<8x1xf32>
    %80 = arith.divf %78, %79 : vector<8x1xf32>
    %81 = vector.broadcast %73 : vector<8x1xf32> to vector<8x32xf32>
    %82 = arith.subf %67, %81 : vector<8x32xf32>
    %cst_39 = arith.constant 9.99999974E-6 : f32
    %83 = vector.broadcast %cst_39 : f32 to vector<8x1xf32>
    %84 = arith.addf %80, %83 : vector<8x1xf32>
    %85 = math.rsqrt %84 : vector<8x1xf32>
    %86 = vector.broadcast %85 : vector<8x1xf32> to vector<8x32xf32>
    %87 = arith.mulf %82, %86 : vector<8x32xf32>
    %88 = vector.broadcast %68 : vector<1x32xf32> to vector<8x32xf32>
    %89 = arith.mulf %87, %88 : vector<8x32xf32>
    %90 = vector.broadcast %69 : vector<1x32xf32> to vector<8x32xf32>
    %91 = arith.addf %89, %90 : vector<8x32xf32>
    %92 = arith.truncf %91 : vector<8x32xf32> to vector<8x32xbf16>
    %c0_40 = arith.constant 0 : index
    %c0_41 = arith.constant 0 : index
    %93 = vector.load %arg11[%c0_40, %c0_41] : memref<64x32xbf16, #tpu.memory_space<vmem>>, vector<64x32xbf16>
    %cst_42 = arith.constant dense<0.000000e+00> : vector<8x64xf32>
    %94 = tpu.matmul %92, %93, %cst_42 {dimension_numbers = #tpu.dot_dimension_numbers<[1], [1], [0], [0], [0, 0, 1, 0], [], []>} : vector<8x32xbf16>, vector<64x32xbf16>, vector<8x64xf32> -> vector<8x64xf32>
    %c0_43 = arith.constant 0 : index
    %c0_44 = arith.constant 0 : index
    %95 = vector.load %arg12[%c0_43, %c0_44] : memref<1x64xf32, #tpu.memory_space<vmem>>, vector<1x64xf32>
    %96 = vector.broadcast %95 : vector<1x64xf32> to vector<8x64xf32>
    %97 = arith.addf %94, %96 : vector<8x64xf32>
    %cst_45 = arith.constant 5.000000e-01 : f32
    %98 = vector.broadcast %cst_45 : f32 to vector<8x64xf32>
    %99 = arith.mulf %98, %97 : vector<8x64xf32>
    %cst_46 = arith.constant 0.707106769 : f32
    %100 = vector.broadcast %cst_46 : f32 to vector<8x64xf32>
    %101 = arith.mulf %97, %100 : vector<8x64xf32>
    %102 = math.erf %101 : vector<8x64xf32>
    %cst_47 = arith.constant 1.000000e+00 : f32
    %103 = vector.broadcast %cst_47 : f32 to vector<8x64xf32>
    %104 = arith.addf %103, %102 : vector<8x64xf32>
    %105 = arith.mulf %99, %104 : vector<8x64xf32>
    %106 = arith.truncf %105 : vector<8x64xf32> to vector<8x64xbf16>
    %c0_48 = arith.constant 0 : index
    %c0_49 = arith.constant 0 : index
    %107 = vector.load %arg13[%c0_48, %c0_49] : memref<32x64xbf16, #tpu.memory_space<vmem>>, vector<32x64xbf16>
    %cst_50 = arith.constant dense<0.000000e+00> : vector<8x32xf32>
    %108 = tpu.matmul %106, %107, %cst_50 {dimension_numbers = #tpu.dot_dimension_numbers<[1], [1], [0], [0], [0, 0, 1, 0], [], []>} : vector<8x64xbf16>, vector<32x64xbf16>, vector<8x32xf32> -> vector<8x32xf32>
    %c0_51 = arith.constant 0 : index
    %c0_52 = arith.constant 0 : index
    %109 = vector.load %arg14[%c0_51, %c0_52] : memref<1x32xf32, #tpu.memory_space<vmem>>, vector<1x32xf32>
    %110 = vector.broadcast %109 : vector<1x32xf32> to vector<8x32xf32>
    %111 = arith.addf %108, %110 : vector<8x32xf32>
    %112 = arith.addf %67, %111 : vector<8x32xf32>
    %113 = arith.truncf %112 : vector<8x32xf32> to vector<8x32xbf16>
    %c0_53 = arith.constant 0 : index
    %c0_54 = arith.constant 0 : index
    %c0_55 = arith.constant 0 : index
    %114 = vector.load %arg15[%c0_53, %c0_54, %c0_55] : memref<1x8x32xbf16, #tpu.memory_space<vmem>>, vector<1x8x32xbf16>
    %115 = vector.shape_cast %114 : vector<1x8x32xbf16> to vector<8x32xbf16>
    %116 = vector.shape_cast %113 : vector<8x32xbf16> to vector<1x8x32xbf16>
    tpu.vector_store %arg15[%c0_53, %c0_54, %c0_55], %116 {strides = array<i32>} : memref<1x8x32xbf16, #tpu.memory_space<vmem>>, vector<1x8x32xbf16>,
    return
  }
  func.func @transform_0(%arg0: i32) -> (i32, i32, i32) {
    %c0_i32 = arith.constant 0 : i32
    %c0_i32_0 = arith.constant 0 : i32
    %c0_i32_1 = arith.constant 0 : i32
    return %arg0, %c0_i32, %c0_i32_0 : i32, i32, i32
  }
  func.func @transform_1(%arg0: i32) -> (i32, i32) {
    %c0_i32 = arith.constant 0 : i32
    %c0_i32_0 = arith.constant 0 : i32
    %c0_i32_1 = arith.constant 0 : i32
    return %c0_i32, %c0_i32_0 : i32, i32
  }
  func.func @transform_2(%arg0: i32) -> (i32, i32) {
    %c0_i32 = arith.constant 0 : i32
    %c0_i32_0 = arith.constant 0 : i32
    %c0_i32_1 = arith.constant 0 : i32
    return %c0_i32, %c0_i32_0 : i32, i32
  }
  func.func @transform_3(%arg0: i32) -> (i32, i32) {
    %c0_i32 = arith.constant 0 : i32
    %c0_i32_0 = arith.constant 0 : i32
    %c0_i32_1 = arith.constant 0 : i32
    return %c0_i32, %c0_i32_0 : i32, i32
  }
  func.func @transform_4(%arg0: i32) -> (i32, i32) {
    %c0_i32 = arith.constant 0 : i32
    %c0_i32_0 = arith.constant 0 : i32
    %c0_i32_1 = arith.constant 0 : i32
    return %c0_i32, %c0_i32_0 : i32, i32
  }
  func.func @transform_5(%arg0: i32) -> (i32, i32) {
    %c0_i32 = arith.constant 0 : i32
    %c0_i32_0 = arith.constant 0 : i32
    %c0_i32_1 = arith.constant 0 : i32
    return %c0_i32, %c0_i32_0 : i32, i32
  }
  func.func @transform_6(%arg0: i32) -> (i32, i32, i32) {
    %c0_i32 = arith.constant 0 : i32
    %c0_i32_0 = arith.constant 0 : i32
    %c0_i32_1 = arith.constant 0 : i32
    %c0_i32_2 = arith.constant 0 : i32
    return %c0_i32, %c0_i32_0, %c0_i32_1 : i32, i32, i32
  }
  func.func @transform_7(%arg0: i32) -> (i32, i32) {
    %c0_i32 = arith.constant 0 : i32
    %c0_i32_0 = arith.constant 0 : i32
    %c0_i32_1 = arith.constant 0 : i32
    return %c0_i32, %c0_i32_0 : i32, i32
  }
  func.func @transform_8(%arg0: i32) -> (i32, i32) {
    %c0_i32 = arith.constant 0 : i32
    %c0_i32_0 = arith.constant 0 : i32
    %c0_i32_1 = arith.constant 0 : i32
    return %c0_i32, %c0_i32_0 : i32, i32
  }
  func.func @transform_9(%arg0: i32) -> (i32, i32) {
    %c0_i32 = arith.constant 0 : i32
    %c0_i32_0 = arith.constant 0 : i32
    %c0_i32_1 = arith.constant 0 : i32
    return %c0_i32, %c0_i32_0 : i32, i32
  }
  func.func @transform_10(%arg0: i32) -> (i32, i32) {
    %c0_i32 = arith.constant 0 : i32
    %c0_i32_0 = arith.constant 0 : i32
    %c0_i32_1 = arith.constant 0 : i32
    return %c0_i32, %c0_i32_0 : i32, i32
  }
  func.func @transform_11(%arg0: i32) -> (i32, i32) {
    %c0_i32 = arith.constant 0 : i32
    %c0_i32_0 = arith.constant 0 : i32
    %c0_i32_1 = arith.constant 0 : i32
    return %c0_i32, %c0_i32_0 : i32, i32
  }
  func.func @transform_12(%arg0: i32) -> (i32, i32) {
    %c0_i32 = arith.constant 0 : i32
    %c0_i32_0 = arith.constant 0 : i32
    %c0_i32_1 = arith.constant 0 : i32
    return %c0_i32, %c0_i32_0 : i32, i32
  }
  func.func @transform_13(%arg0: i32) -> (i32, i32) {
    %c0_i32 = arith.constant 0 : i32
    %c0_i32_0 = arith.constant 0 : i32
    %c0_i32_1 = arith.constant 0 : i32
    return %c0_i32, %c0_i32_0 : i32, i32
  }
  func.func @transform_14(%arg0: i32) -> (i32, i32, i32) {
    %c0_i32 = arith.constant 0 : i32
    %c0_i32_0 = arith.constant 0 : i32
    %c0_i32_1 = arith.constant 0 : i32
    return %arg0, %c0_i32, %c0_i32_0 : i32, i32, i32
  }
}

module attributes {stable_mosaic.version = 11 : i64} {
  func.func @final_norm_kernel(%arg0: i32, %arg1: memref<16x32xbf16, #tpu.memory_space<vmem>>, %arg2: memref<1x32xf32, #tpu.memory_space<vmem>>, %arg3: memref<1x32xf32, #tpu.memory_space<vmem>>, %arg4: memref<16x32xf32, #tpu.memory_space<vmem>>) attributes {dimension_semantics = [#tpu.dimension_semantics<parallel>], iteration_bounds = array<i64: 1>, scalar_prefetch = 0 : i64, scratch_operands = 0 : i64, tpu.core_type = #tpu.core_type<tc>, window_params = [{transform_indices = @transform_0, window_bounds = array<i64: 16, 32>}, {pipeline_mode = #tpu.pipeline_mode<synchronous>, transform_indices = @transform_1, window_bounds = array<i64: 1, 32>}, {pipeline_mode = #tpu.pipeline_mode<synchronous>, transform_indices = @transform_2, window_bounds = array<i64: 1, 32>}, {transform_indices = @transform_3, window_bounds = array<i64: 16, 32>}]} {
    %c0 = arith.constant 0 : index
    %c0_0 = arith.constant 0 : index
    %0 = vector.load %arg1[%c0, %c0_0] : memref<16x32xbf16, #tpu.memory_space<vmem>>, vector<16x32xbf16>
    %1 = arith.extf %0 : vector<16x32xbf16> to vector<16x32xf32>
    %c0_1 = arith.constant 0 : index
    %c0_2 = arith.constant 0 : index
    %2 = vector.load %arg2[%c0_1, %c0_2] : memref<1x32xf32, #tpu.memory_space<vmem>>, vector<1x32xf32>
    %c0_3 = arith.constant 0 : index
    %c0_4 = arith.constant 0 : index
    %3 = vector.load %arg3[%c0_3, %c0_4] : memref<1x32xf32, #tpu.memory_space<vmem>>, vector<1x32xf32>
    %cst = arith.constant dense<0.000000e+00> : vector<16xf32>
    %4 = vector.multi_reduction <add>, %1, %cst [1] : vector<16x32xf32> to vector<16xf32>
    %5 = vector.shape_cast %4 : vector<16xf32> to vector<16x1xf32>
    %cst_5 = arith.constant 3.200000e+01 : f32
    %6 = vector.broadcast %cst_5 : f32 to vector<16x1xf32>
    %7 = arith.divf %5, %6 : vector<16x1xf32>
    %8 = vector.broadcast %7 : vector<16x1xf32> to vector<16x32xf32>
    %9 = arith.subf %1, %8 : vector<16x32xf32>
    %10 = arith.mulf %9, %9 : vector<16x32xf32>
    %cst_6 = arith.constant dense<0.000000e+00> : vector<16xf32>
    %11 = vector.multi_reduction <add>, %10, %cst_6 [1] : vector<16x32xf32> to vector<16xf32>
    %12 = vector.shape_cast %11 : vector<16xf32> to vector<16x1xf32>
    %cst_7 = arith.constant 3.200000e+01 : f32
    %13 = vector.broadcast %cst_7 : f32 to vector<16x1xf32>
    %14 = arith.divf %12, %13 : vector<16x1xf32>
    %15 = vector.broadcast %7 : vector<16x1xf32> to vector<16x32xf32>
    %16 = arith.subf %1, %15 : vector<16x32xf32>
    %cst_8 = arith.constant 9.99999974E-6 : f32
    %17 = vector.broadcast %cst_8 : f32 to vector<16x1xf32>
    %18 = arith.addf %14, %17 : vector<16x1xf32>
    %19 = math.rsqrt %18 : vector<16x1xf32>
    %20 = vector.broadcast %19 : vector<16x1xf32> to vector<16x32xf32>
    %21 = arith.mulf %16, %20 : vector<16x32xf32>
    %22 = vector.broadcast %2 : vector<1x32xf32> to vector<16x32xf32>
    %23 = arith.mulf %21, %22 : vector<16x32xf32>
    %24 = vector.broadcast %3 : vector<1x32xf32> to vector<16x32xf32>
    %25 = arith.addf %23, %24 : vector<16x32xf32>
    %c0_9 = arith.constant 0 : index
    %c0_10 = arith.constant 0 : index
    %26 = vector.load %arg4[%c0_9, %c0_10] : memref<16x32xf32, #tpu.memory_space<vmem>>, vector<16x32xf32>
    tpu.vector_store %arg4[%c0_9, %c0_10], %25 {strides = array<i32>} : memref<16x32xf32, #tpu.memory_space<vmem>>, vector<16x32xf32>,
    return
  }
  func.func @transform_0(%arg0: i32) -> (i32, i32) {
    %c0_i32 = arith.constant 0 : i32
    %c0_i32_0 = arith.constant 0 : i32
    return %arg0, %c0_i32 : i32, i32
  }
  func.func @transform_1(%arg0: i32) -> (i32, i32) {
    %c0_i32 = arith.constant 0 : i32
    %c0_i32_0 = arith.constant 0 : i32
    %c0_i32_1 = arith.constant 0 : i32
    return %c0_i32, %c0_i32_0 : i32, i32
  }
  func.func @transform_2(%arg0: i32) -> (i32, i32) {
    %c0_i32 = arith.constant 0 : i32
    %c0_i32_0 = arith.constant 0 : i32
    %c0_i32_1 = arith.constant 0 : i32
    return %c0_i32, %c0_i32_0 : i32, i32
  }
  func.func @transform_3(%arg0: i32) -> (i32, i32) {
    %c0_i32 = arith.constant 0 : i32
    %c0_i32_0 = arith.constant 0 : i32
    return %arg0, %c0_i32 : i32, i32
  }
}

</mosaic_0001>

<bundles_post_ra>
// kernel: transformer_forward.5
= control target key start
LH: loop header
LB: loop body
LE: loop exit
PB: predicated region body
PF: predicated region fallthrough
CT: control target
= control target key end

     0   :  { %vm21_vm0 = vcmask 261120   ;;  %s187_s0 = inlined_call_operand.vmem [shape: bf16[16,32], index: 0, kind: input, shape index: {}]   ;;  %s188_s1 = inlined_call_operand.vmem [shape: f32[1,32], index: 1, kind: input, shape index: {}]   ;;  %s189_s2 = inlined_call_operand.vmem [shape: f32[1,32], index: 2, kind: input, shape index: {}]   ;;  %s190_s3 = inlined_call_operand.hbm [shape: f32[16,32], index: 3, kind: output, shape index: {}]  }
   0x1   :  { %v104_v0 = vld [vmem:[%s187_s0] sm:$0xff]  }
   0x2   :  { %v105_v1 = vunpack.c.l.bf16 %v104_v0 }
   0x3   :  { %8 = vsyncpa [#allocation3], 0  ;;  %v106_v3 = vunpack.c.h.bf16 %v104_v0  ;;  %v145_v5 = vmov 32.0   ;;  %v111_v36 = vld [vmem:[%s188_s1] ss:$0 sm:$0xff]  ;;  %s146_s1 = smov [#allocation2]  }
   0x4   :  { %v22_v2 = vsel %vm21_vm0, %v105_v1, 0.0  ;;  %113 = vrcp.f32 %v145_v5  ;;  %v112_v40 = vld [vmem:[%s189_s2] ss:$0 sm:$0xff]  ;;  %s89_s17 = sshll.u32 %s146_s1, 4  ;;  %s91_s20 = sshll.u32 %s190_s3, 4  ;;  %s90_s17 = int_to_ptr.vmem [resolvable:$true] %s89_s17  ;;  %s92_s20 = int_to_ptr.hbm [resolvable:$true] %s91_s20 }
   0x5   :  { %23 = vadd.xlane.f32.xlu0 %v22_v2  ;;  %v25_v4 = vsel %vm21_vm0, %v106_v3, 0.0  ;;  %s147_s2 = smov 128   ;;  %s148_s21 = smov 8  }
   0xa   :  { %v114_v6 = vpop.eup %113 }
   0xb   :  { %v29_v7 = vmul.f32 32.0, %v114_v6  ;;  %vm33_vm1 = vweird.f32 %v114_v6 }
   0xd   :  { %26 = vadd.xlane.f32.xlu0 %v25_v4  ;;  %v30_v8 = vsub.f32 1.0, %v29_v7 }
   0xf   :  { %v31_v9 = vmul.f32 %v114_v6, %v30_v8 }
  0x11   :  { %v32_v10 = vadd.f32 %v114_v6, %v31_v9 }
  0x13   :  { %v34_v11 = vsel %vm33_vm1, %v114_v6, %v32_v10 }
  0x78   :  { %v24_v12 = vpop.xlane.xlu0 %23 }
  0x79   :  { %v35_v13 = vmul.f32 %v34_v11, %v24_v12 }
  0x7b   :  { %v37_v14 = vsub.f32 %v105_v1, %v35_v13 }
  0x7d   :  { %v39_v15 = vmul.f32 %v37_v14, %v37_v14 }
  0x7f   :  { %v41_v16 = vsel %vm21_vm0, %v39_v15, 0.0 }
  0x80   :  { %42 = vadd.xlane.f32.xlu1 %v41_v16  ;;  %v27_v17 = vpop.xlane.xlu0 %26 }
  0x81   :  { %v36_v18 = vmul.f32 %v34_v11, %v27_v17 }
  0x83   :  { %v38_v19 = vsub.f32 %v106_v3, %v36_v18 }
  0x85   :  { %v40_v20 = vmul.f32 %v38_v19, %v38_v19 }
  0x87   :  { %v44_v21 = vsel %vm21_vm0, %v40_v20, 0.0 }
  0x88   :  { %45 = vadd.xlane.f32.xlu1 %v44_v21 }
  0xf3   :  { %v43_v22 = vpop.xlane.xlu1 %42 }
  0xf4   :  { %v47_v23 = vmul.f32 %v43_v22, %v34_v11 }
  0xf6   :  { %v49_v24 = vadd.f32 1e-05, %v47_v23 }
  0xf8   :  { %115 = vrsqrt.f32 %v49_v24  ;;  %vm57_vm3 = vweird.f32 %v49_v24 }
  0xfb   :  { %v46_v25 = vpop.xlane.xlu1 %45 }
  0xfc   :  { %v48_v26 = vmul.f32 %v46_v25, %v34_v11 }
  0xfe   :  { %v116_v27 = vpop.eup %115  ;;  %v50_v28 = vadd.f32 1e-05, %v48_v26 }
  0xff   :  { %v52_v29 = vmul.f32 %v116_v27, %v49_v24  ;;  %vm58_vm2 = vweird.f32 %v116_v27 }
 0x100   :  { %117 = vrsqrt.f32 %v50_v28  ;;  %vm59_vm4 = vmor %vm57_vm3, %vm58_vm2  ;;  %vm67_vm6 = vweird.f32 %v50_v28 }
 0x101   :  { %v53_v30 = vmul.f32 %v116_v27, %v52_v29 }
 0x103   :  { %v54_v31 = vmul.f32 0.5, %v53_v30 }
 0x105   :  { %v55_v32 = vsub.f32 1.5, %v54_v31 }
 0x106   :  { %v118_v33 = vpop.eup %117 }
 0x107   :  { %v56_v34 = vmul.f32 %v116_v27, %v55_v32  ;;  %v62_v35 = vmul.f32 %v118_v33, %v50_v28  ;;  %vm68_vm5 = vweird.f32 %v118_v33 }
 0x108   :  { %vm69_vm7 = vmor %vm67_vm6, %vm68_vm5 }
 0x109   :  { %v60_v37 = vsel %vm59_vm4, %v116_v27, %v56_v34  ;;  %v63_v38 = vmul.f32 %v118_v33, %v62_v35 }
 0x10a   :  { %v71_v39 = vmul.f32 %v60_v37, %v37_v14 }
 0x10b   :  { %v64_v41 = vmul.f32 0.5, %v63_v38 }
 0x10c   :  { %v76_v42 = vmul.f32 %v111_v36, %v71_v39 }
 0x10d   :  { %v65_v43 = vsub.f32 1.5, %v64_v41 }
 0x10e   :  { %v81_v44 = vadd.f32 %v112_v40, %v76_v42 }
 0x10f   :  { %v66_v45 = vmul.f32 %v118_v33, %v65_v43 }
 0x110   :  { %83 = vst.msk [vmem:[#allocation2] sm:$0xff] %vm21_vm0, %v81_v44 }
 0x111   :  { %v70_v46 = vsel %vm69_vm7, %v118_v33, %v66_v45 }
 0x112   :  { %v72_v47 = vmul.f32 %v70_v46, %v38_v19 }
 0x114   :  { %v77_v48 = vmul.f32 %v111_v36, %v72_v47 }
 0x116   :  { %v82_v49 = vadd.f32 %v112_v40, %v77_v48 }
 0x118   :  { %84 = vst.msk [vmem:[#allocation2 + $0x8] sm:$0xff] %vm21_vm0, %v82_v49 }
 0x119   :  { %97 = dma.vmem_to_hbm [thread:$0]  %s90_s17, 256, %s92_s20, [#allocation3], %s147_s2, %s147_s2, %s148_s21  }
 0x11a   :  { %143 = dma.done.wait [#allocation3], 256  }
 0x11b   :  { %144 = vsyncadd [#allocation3], 4294967040 }
 0x11c   :  { %102 = vsyncpa [#allocation3], 1 }

// kernel: transformer_forward.3
= control target key start
LH: loop header
LB: loop body
LE: loop exit
PB: predicated region body
PF: predicated region fallthrough
CT: control target
= control target key end

     0   :  { %s1866_s29 = smov 0   ;;  %s2211_s0 = inlined_call_operand.vmem [shape: bf16[2,8,32], index: 0, kind: input, shape index: {}]   ;;  %s2212_s1 = inlined_call_operand.vmem [shape: f32[1,32], index: 1, kind: input, shape index: {}]   ;;  %s2213_s2 = inlined_call_operand.vmem [shape: f32[1,32], index: 2, kind: input, shape index: {}]   ;;  %s2214_s3 = inlined_call_operand.vmem [shape: bf16[64,32], index: 3, kind: input, shape index: {}]   ;;  %s2215_s4 = inlined_call_operand.vmem [shape: bf16[64,32], index: 4, kind: input, shape index: {}]   ;;  %s2216_s5 = inlined_call_operand.vmem [shape: bf16[64,32], index: 5, kind: input, shape index: {}]   ;;  %s2217_s6 = inlined_call_operand.vmem [shape: bf16[4,16,32], index: 6, kind: input, shape index: {}]   ;;  %s2218_s7 = inlined_call_operand.vmem [shape: f32[1,32], index: 7, kind: input, shape index: {}]   ;;  %s2219_s8 = inlined_call_operand.vmem [shape: f32[1,32], index: 8, kind: input, shape index: {}]   ;;  %s2220_s9 = inlined_call_operand.vmem [shape: f32[1,32], index: 9, kind: input, shape index: {}]   ;;  %s2221_s10 = inlined_call_operand.vmem [shape: bf16[64,32], index: 10, kind: input, shape index: {}]   ;;  %s2222_s11 = inlined_call_operand.vmem [shape: f32[1,64], index: 11, kind: input, shape index: {}]   ;;  %s2223_s12 = inlined_call_operand.vmem [shape: bf16[32,64], index: 12, kind: input, shape index: {}]   ;;  %s2224_s13 = inlined_call_operand.vmem [shape: f32[1,32], index: 13, kind: input, shape index: {}]   ;;  %s2225_s14 = inlined_call_operand.vmem [shape: bf16[2,8,32], index: 14, kind: output, shape index: {}]  }
   0x1 LB: > { %s1595_s30 = sadd.s32 4294967295, %s1783_s29   ;;  %p1599_p0 = scmp.ge.s32.totalorder %s1783_s29, 1  ;;  %s1783_s29 = sphi %s1866_s29, %s24_s29  }
   0x2   : > { %p411_p1 = scmp.lt.s32.totalorder %s1783_s29, 3 }
   0x4   : > { %p412_p2 = pnand %p1599_p0, %p411_p1 }
   0x5   : > { %p455_p3 = scmp.lt.s32.totalorder (!%p412_p2), %s1595_s30, 1  ;;  %s1786_s21 = smov (!%p412_p2), 80  }
   0x6   : > { %415 = sbr.rel (%p412_p2) target bundleno = 1743 (0x6cf), region = 76  ;;  %s1787_s22 = smov (!%p412_p2), 112  }
   0x7   : > { %s1788_s23 = smov (!%p412_p2), 96  }
   0xb   : > { %s2227_s30 = smov (!%p455_p3, %s1595_s30), 1  ;;  %vm468_vm0 = vcmask 261120   ;;  %v1785_v3 = vmov 32.0   ;;  %v1713_v4 = vld [vmem:[%s2214_s3 + $0x18] sm:$0xff]  ;;  %v1712_v21 = vld [vmem:[%s2214_s3 + $0x10] sm:$0xff]  ;;  %v1711_v27 = vld [vmem:[%s2214_s3 + $0x8] sm:$0xff] }
   0xc   : > { %s1600_s15 = sshll.u32 %s2227_s30, 2  ;;  %1753 = vrcp.f32 %v1785_v3  ;;  %v1717_v5 = vld [vmem:[%s2215_s4 + $0x18] sm:$0xff]  ;;  %v548_v7 = vsel %vm468_vm0, %v1713_v4, 0  ;;  %v1716_v22 = vld [vmem:[%s2215_s4 + $0x10] sm:$0xff]  ;;  %v545_v24 = vsel %vm468_vm0, %v1712_v21, 0  ;;  %v1715_v28 = vld [vmem:[%s2215_s4 + $0x8] sm:$0xff] }
   0xd   : > { %s458_s18 = scalar_lea.vmem %s2211_s0, %s1600_s15  ;;  %v1721_v6 = vld [vmem:[%s2216_s5 + $0x18] sm:$0xff]  ;;  %v727_v8 = vsel %vm468_vm0, %v1717_v5, 0  ;;  %554 = vmatpush.bf16.xpose.msra.mxu0 %v548_v7  ;;  %v1720_v23 = vld [vmem:[%s2216_s5 + $0x10] sm:$0xff]  ;;  %v724_v25 = vsel %vm468_vm0, %v1716_v22, 0  ;;  %v1719_v29 = vld [vmem:[%s2216_s5 + $0x8] sm:$0xff]  ;;  %v542_v30 = vsel %vm468_vm0, %v1711_v27, 0  ;;  %s462_s17 = scalar_lea.vmem %s2225_s14, %s1600_s15 }
   0xe   : > { %v464_v0 = vld [vmem:[%s458_s18] sm:$0xf]  ;;  %v904_v9 = vsel %vm468_vm0, %v1721_v6, 0  ;;  %733 = vmatpush.bf16.xpose.msra.mxu1 %v727_v8  ;;  %v901_v26 = vsel %vm468_vm0, %v1720_v23, 0  ;;  %v721_v31 = vsel %vm468_vm0, %v1715_v28, 0  ;;  %v898_v32 = vsel %vm468_vm0, %v1719_v29, 0 }
   0xf   : > { %v1882_v1 = vunpack.c.l.bf16 %v464_v0  ;;  %910 = vmatpush.bf16.xpose.msra.mxu2 %v904_v9  ;;  %v1710_v33 = vld [vmem:[%s2214_s3] sm:$0xff]  ;;  %vm575_vm5 = vcmask 1047556   ;;  %vm1043_vm6 = vcmask 130048   ;;  %vm1164_vm7 = vcmask 1043456  }
  0x10   : > { %v1714_v34 = vld [vmem:[%s2215_s4] sm:$0xff]  ;;  %v539_v36 = vsel %vm468_vm0, %v1710_v33, 0  ;;  %vm1120_vm8 = vcmask 64512   ;;  %vm1515_vm12 = vcmask 523264  }
  0x11   : > { %v469_v2 = vsel %vm468_vm0, %v1882_v1, 0.0  ;;  %v1718_v35 = vld [vmem:[%s2216_s5] sm:$0xff]  ;;  %v718_v37 = vsel %vm468_vm0, %v1714_v34, 0 }
  0x12   : > { %470 = vadd.xlane.f32.xlu0 %v469_v2  ;;  %v1754_v10 = vpop.eup %1753  ;;  %v895_v38 = vsel %vm468_vm0, %v1718_v35, 0  ;;  %v1746_v48 = vld [vmem:[%s2212_s1] ss:$0 sm:$0xff]  ;;  %v1789_v2 = vmov 1983009808  }
  0x13   : > { %v473_v11 = vmul.f32 32.0, %v1754_v10  ;;  %vm477_vm1 = vweird.f32 %v1754_v10  ;;  %v1747_v51 = vld [vmem:[%s2213_s2] ss:$0 sm:$0xff]  ;;  %v580_v3 = vunpack.c.l.s4 %v1789_v2 }
  0x15   : > { %v474_v12 = vsub.f32 1.0, %v473_v11  ;;  %555 = vmatpush.bf16.xpose.msra.mxu0 %v545_v24  ;;  %v1957_v8 = vunpack.c.0.s8 %v580_v3  ;;  %v1790_v11 = vmov 1934713408  }
  0x16   : > { %734 = vmatpush.bf16.xpose.msra.mxu1 %v724_v25 }
  0x17   : > { %v475_v13 = vmul.f32 %v1754_v10, %v474_v12  ;;  %911 = vmatpush.bf16.xpose.msra.mxu2 %v901_v26  ;;  %v604_v12 = vunpack.c.l.s4 %v1790_v11 }
  0x19   : > { %v476_v14 = vadd.f32 %v1754_v10, %v475_v13  ;;  %v1962_v23 = vunpack.c.0.s8 %v604_v12 }
  0x1b   : > { %v1898_v15 = vsel %vm477_vm1, %v1754_v10, %v476_v14  ;;  %vm1540_vm1 = vcmask 257024  }
  0x1d   : > { %556 = vmatpush.bf16.xpose.msra.mxu0 %v542_v30 }
  0x1e   : > { %735 = vmatpush.bf16.xpose.msra.mxu1 %v721_v31 }
  0x1f   : > { %912 = vmatpush.bf16.xpose.msra.mxu2 %v898_v32 }
  0x25   : > { %557 = vmatpush.bf16.xpose.msra.mxu0 %v539_v36 }
  0x26   : > { %736 = vmatpush.bf16.xpose.msra.mxu1 %v718_v37 }
  0x27   : > { %913 = vmatpush.bf16.xpose.msra.mxu2 %v895_v38 }
  0x85   : > { %v471_v16 = vpop.xlane.xlu0 %470 }
  0x86   : > { %v479_v17 = vmul.f32 %v1898_v15, %v471_v16 }
  0x88   : > { %v480_v18 = vsub.f32 %v1882_v1, %v479_v17 }
  0x8a   : > { %v481_v19 = vmul.f32 %v480_v18, %v480_v18 }
  0x8c   : > { %v482_v20 = vsel %vm468_vm0, %v481_v19, 0.0 }
  0x8d   : > { %483 = vadd.xlane.f32.xlu0 %v482_v20 }
 0x100   : > { %v484_v39 = vpop.xlane.xlu0 %483 }
 0x101   : > { %v485_v40 = vmul.f32 %v484_v39, %v1898_v15 }
 0x103   : > { %v486_v41 = vadd.f32 1e-05, %v485_v40 }
 0x105   : > { %1755 = vrsqrt.f32 %v486_v41  ;;  %vm493_vm3 = vweird.f32 %v486_v41 }
 0x10b   : > { %v1756_v42 = vpop.eup %1755 }
 0x10c   : > { %v488_v43 = vmul.f32 %v1756_v42, %v486_v41  ;;  %vm494_vm2 = vweird.f32 %v1756_v42 }
 0x10d   : > { %vm495_vm4 = vmor %vm493_vm3, %vm494_vm2 }
 0x10e   : > { %v489_v44 = vmul.f32 %v1756_v42, %v488_v43 }
 0x110   : > { %v490_v45 = vmul.f32 0.5, %v489_v44 }
 0x112   : > { %v491_v46 = vsub.f32 1.5, %v490_v45 }
 0x114   : > { %v492_v47 = vmul.f32 %v1756_v42, %v491_v46 }
 0x116   : > { %v496_v49 = vsel %vm495_vm4, %v1756_v42, %v492_v47 }
 0x117   : > { %v497_v50 = vmul.f32 %v496_v49, %v480_v18 }
 0x119   : > { %v501_v52 = vmul.f32 %v1746_v48, %v497_v50 }
 0x11b   : > { %v505_v53 = vadd.f32 %v1747_v51, %v501_v52 }
 0x11d   : > { %v506_v54 = vpack.c.bf16 %v505_v53, %v505_v53 }
 0x11f   : > { %1618 = vmatmul.msk.bf16.vlgmr.msra.gmra.mxu0 %vm468_vm0, %v506_v54  ;;  %1635 = vmatmul.msk.bf16.vlgmr.msra.gmra.mxu1 %vm468_vm0, %v506_v54 }
 0x120   : > { %1652 = vmatmul.msk.bf16.vlgmr.msra.gmra.mxu2 %vm468_vm0, %v506_v54 }
 0x19c   : > { %v559_v55 = vpop.f32.mrf.mxu0  ;;  %v738_v56 = vpop.f32.mrf.mxu1 }
 0x19d   : > { %v563_v57 = vmul.f32 0.25, %v559_v55  ;;  %749 = vrot.lane.b32.xlu2 %v738_v56, %s1786_s21  ;;  %743 = vrot.lane.b32.xlu1 %v738_v56, %s1787_s22  ;;  %v754_v17 = vrot.slane %v738_v56, 4 }
 0x19f   : > { %568 = vrot.lane.b32.xlu0 %v563_v57, %s1788_s23  ;;  %v577_v20 = vrot.slane %v563_v57, 4 }
 0x1a3   : > { %v1949_v58 = vpop.f32.mrf.mxu2 }
 0x1a4   : > { %v561_v59 = vpop.f32.mrf.mxu0  ;;  %v740_v60 = vpop.f32.mrf.mxu1  ;;  %v931_v50 = vrot.slane %v1949_v58, 4 }
 0x1a5   : > { %746 = vrot.lane.b32.xlu1 %v738_v56, %s1788_s23  ;;  %565 = vrot.lane.b32.xlu2 %v563_v57, %s1787_s22 }
 0x1ab   : > { %v917_v61 = vpop.f32.mrf.mxu2 }
 0x1ad   : > { %571 = vrot.lane.b32.xlu1 %v563_v57, %s1786_s21  ;;  %920 = vrot.lane.b32.xlu2 %v1949_v58, %s1787_s22 }
 0x1b5   : > { %923 = vrot.lane.b32.xlu1 %v1949_v58, %s1788_s23  ;;  %926 = vrot.lane.b32.xlu2 %v1949_v58, %s1786_s21 }
 0x1f7   : > { %v750_v62 = vpop.permute.xlu2 %749 }
 0x1f8   : > { %v764_v6 = vrot.slane %v750_v62, 4 }
 0x1ff   : > { %v1954_v63 = vpop.permute.xlu2 %565 }
 0x200   : > { %v589_v46 = vrot.slane %v1954_v63, 4 }
 0x207   : > { %v921_v0 = vpop.permute.xlu2 %920 }
 0x208   : > { %v943_v18 = vrot.slane %v921_v0, 4 }
 0x20f   : > { %v744_v4 = vpop.permute.xlu1 %743  ;;  %v927_v9 = vpop.permute.xlu2 %926 }
 0x210   : > { %v766_v5 = vrot.slane %v744_v4, 4  ;;  %v765_v10 = vsel %vm575_vm5, %v764_v6, %v744_v4  ;;  %v941_v16 = vrot.slane %v927_v9, 4  ;;  %v944_v27 = vsel %vm575_vm5, %v927_v9, %v943_v18 }
 0x211   : > { %v569_v14 = vpop.permute.xlu0 %568  ;;  %v771_v19 = vperm.slane %v765_v10, %v1957_v8  ;;  %v1973_v36 = vperm.slane %v944_v27, %v1957_v8 }
 0x212   : > { %v767_v7 = vsel %vm575_vm5, %v750_v62, %v766_v5  ;;  %v574_v22 = vrot.slane %v569_v14, 4  ;;  %v942_v29 = vsel %vm575_vm5, %v941_v16, %v921_v0  ;;  %v578_v30 = vsel %vm575_vm5, %v569_v14, %v577_v20 }
 0x213   : > { %v775_v13 = vperm.slane %v767_v7, %v1957_v8  ;;  %v776_v32 = vrot.slane %v771_v19, 4  ;;  %v1978_v39 = vperm.slane %v942_v29, %v1957_v8  ;;  %v586_v43 = vperm.slane %v578_v30, %v1957_v8 }
 0x214   : > { %v576_v37 = vsel %vm575_vm5, %v574_v22, %v563_v57 }
 0x215   : > { %v788_v26 = vrot.slane %v775_v13, 4  ;;  %v582_v47 = vperm.slane %v576_v37, %v1957_v8  ;;  %v953_v55 = vrot.slane %v1978_v39, 4  ;;  %v613_v60 = vrot.slane %v586_v43, 4 }
 0x217   : > { %v747_v21 = vpop.permute.xlu1 %746  ;;  %v601_v2 = vrot.slane %v582_v47, 4 }
 0x218   : > { %v752_v24 = vrot.slane %v747_v21, 4  ;;  %v755_v25 = vsel %vm575_vm5, %v747_v21, %v754_v17 }
 0x219   : > { %v763_v28 = vperm.slane %v755_v25, %v1957_v8 }
 0x21a   : > { %v753_v31 = vsel %vm575_vm5, %v752_v24, %v738_v56  ;;  %v965_v56 = vrot.slane %v1973_v36, 4 }
 0x21b   : > { %v759_v33 = vperm.slane %v753_v31, %v1957_v8  ;;  %v789_v34 = vsel %vm575_vm5, %v788_v26, %v763_v28  ;;  %v790_v35 = vrot.slane %v763_v28, 4 }
 0x21c   : > { %v795_v38 = vperm.slane %v789_v34, %v1962_v23 }
 0x21d   : > { %v777_v40 = vsel %vm575_vm5, %v776_v32, %v759_v33  ;;  %v778_v41 = vrot.slane %v759_v33, 4  ;;  %v791_v42 = vsel %vm575_vm5, %v775_v13, %v790_v35 }
 0x21e   : > { %v783_v44 = vperm.slane %v777_v40, %v1962_v23  ;;  %v799_v45 = vperm.slane %v791_v42, %v1962_v23  ;;  %v804_v53 = vrot.slane %v795_v38, 4 }
 0x21f   : > { %v779_v48 = vsel %vm575_vm5, %v771_v19, %v778_v41  ;;  %v572_v49 = vpop.permute.xlu1 %571 }
 0x220   : > { %v787_v51 = vperm.slane %v779_v48, %v1962_v23  ;;  %v800_v52 = vrot.slane %v783_v44, 4  ;;  %v806_v54 = vrot.slane %v799_v45, 4  ;;  %v587_v57 = vrot.slane %v572_v49, 4 }
 0x221   : > { %v590_v59 = vsel %vm575_vm5, %v572_v49, %v589_v46  ;;  %v805_v9 = vsel %vm575_vm5, 0.0, %v804_v53 }
 0x222   : > { %v802_v61 = vrot.slane %v787_v51, 4  ;;  %v807_v62 = vsel %vm575_vm5, 0.0, %v806_v54  ;;  %v819_v0 = vsel %vm575_vm5, %v806_v54, %v795_v38  ;;  %v588_v4 = vsel %vm575_vm5, %v587_v57, %v1954_v63 }
 0x223   : > { %v824_v3 = vrot.slane %v807_v62, 4  ;;  %v598_v5 = vperm.slane %v590_v59, %v1957_v8  ;;  %v801_v6 = vsel %vm575_vm5, 0.0, %v800_v52  ;;  %v594_v10 = vperm.slane %v588_v4, %v1957_v8 }
 0x224   : > { %v803_v7 = vsel %vm575_vm5, 0.0, %v802_v61  ;;  %v2003_v12 = vperm.slane %v819_v0, %v1957_v8  ;;  %v808_v18 = vsel %vm575_vm5, %v802_v61, %v783_v44 }
 0x225   : > { %v813_v11 = vrot.slane %v803_v7, 4  ;;  %v611_v13 = vrot.slane %v598_v5, 4  ;;  %v614_v14 = vsel %vm575_vm5, %v598_v5, %v613_v60  ;;  %v599_v16 = vrot.slane %v594_v10, 4 }
 0x226   : > { %v602_v63 = vsel %vm575_vm5, %v594_v10, %v601_v2  ;;  %v622_v17 = vperm.slane %v614_v14, %v1962_v23  ;;  %v825_v19 = vsel %vm575_vm5, %v824_v3, %v805_v9  ;;  %v812_v46 = vperm.slane %v808_v18, %v1957_v8 }
 0x227   : > { %v610_v20 = vperm.slane %v602_v63, %v1962_v23  ;;  %v612_v21 = vsel %vm575_vm5, %v611_v13, %v586_v43  ;;  %v924_v22 = vpop.permute.xlu1 %923  ;;  %v814_v24 = vsel %vm575_vm5, %v813_v11, %v801_v6  ;;  %v600_v25 = vsel %vm575_vm5, %v599_v16, %v582_v47 }
 0x228   : > { %v618_v26 = vperm.slane %v612_v21, %v1962_v23  ;;  %v629_v27 = vrot.slane %v622_v17, 4  ;;  %v929_v28 = vrot.slane %v924_v22, 4  ;;  %v2016_v29 = vperm.slane %v600_v25, %v1962_v23 }
 0x229   : > { %v2018_v30 = vrot.slane %v610_v20, 4  ;;  %v932_v31 = vsel %vm575_vm5, %v924_v22, %v931_v50  ;;  %v818_v32 = vperm.slane %v814_v24, %v1957_v8  ;;  %v829_v38 = vperm.slane %v825_v19, %v1957_v8 }
 0x22a   : > { %v627_v33 = vrot.slane %v618_v26, 4  ;;  %v630_v34 = vsel %vm575_vm5, 0.0, %v629_v27  ;;  %v642_v35 = vsel %vm575_vm5, %v629_v27, %v618_v26  ;;  %v930_v37 = vsel %vm575_vm5, %v929_v28, %v1949_v58 }
 0x22b   : > { %v623_v40 = vrot.slane %v2016_v29, 4  ;;  %v626_v41 = vsel %vm575_vm5, 0.0, %v2018_v30  ;;  %v647_v42 = vrot.slane %v630_v34, 4  ;;  %v936_v44 = vperm.slane %v930_v37, %v1957_v8 }
 0x22c   : > { %v628_v43 = vsel %vm575_vm5, 0.0, %v627_v33  ;;  %v940_v45 = vperm.slane %v932_v31, %v1957_v8  ;;  %v636_v48 = vrot.slane %v626_v41, 4  ;;  %v2036_v58 = vperm.slane %v642_v35, %v1957_v8 }
 0x22d   : > { %v624_v47 = vsel %vm575_vm5, 0.0, %v623_v40  ;;  %v830_v49 = vrot.slane %v818_v32, 4  ;;  %v648_v50 = vsel %vm575_vm5, %v647_v42, %v628_v43  ;;  %v954_v51 = vsel %vm575_vm5, %v953_v55, %v936_v44 }
 0x22e   : > { %v955_v52 = vrot.slane %v936_v44, 4  ;;  %v966_v53 = vsel %vm575_vm5, %v965_v56, %v940_v45  ;;  %v960_v54 = vperm.slane %v954_v51, %v1962_v23  ;;  %v967_v57 = vrot.slane %v940_v45, 4 }
 0x22f   : > { %v972_v59 = vperm.slane %v966_v53, %v1962_v23  ;;  %v831_v60 = vsel %vm575_vm5, %v830_v49, %v812_v46  ;;  %v832_v62 = vrot.slane %v812_v46, 4  ;;  %v842_v2 = vrot.slane %v829_v38, 4 }
 0x230   : > { %v956_v61 = vsel %vm575_vm5, %v1978_v39, %v955_v52  ;;  %v837_v0 = vperm.slane %v831_v60, %v1962_v23  ;;  %v968_v55 = vsel %vm575_vm5, %v1973_v36, %v967_v57  ;;  %v977_v56 = vrot.slane %v960_v54, 4 }
 0x231   : > { %v964_v3 = vperm.slane %v956_v61, %v1962_v23  ;;  %v981_v4 = vrot.slane %v972_v59, 4  ;;  %v976_v5 = vperm.slane %v968_v55, %v1962_v23  ;;  %v843_v6 = vsel %vm575_vm5, %v842_v2, %v2003_v12 }
 0x232   : > { %v833_v7 = vsel %vm575_vm5, %v818_v32, %v832_v62  ;;  %v844_v39 = vrot.slane %v2003_v12, 4  ;;  %v652_v9 = vperm.slane %v648_v50, %v1957_v8  ;;  %v667_v10 = vrot.slane %v2036_v58, 4 }
 0x233   : > { %v979_v11 = vrot.slane %v964_v3, 4  ;;  %v849_v13 = vperm.slane %v843_v6, %v1962_v23  ;;  %v983_v36 = vrot.slane %v976_v5, 4  ;;  %v841_v14 = vperm.slane %v833_v7, %v1962_v23 }
 0x234   : > { %v845_v16 = vsel %vm575_vm5, %v829_v38, %v844_v39  ;;  %v856_v63 = vrot.slane %v837_v0, 4  ;;  %v978_v17 = vsel %vm575_vm5, 0.0, %v977_v56  ;;  %v982_v20 = vsel %vm575_vm5, 0.0, %v981_v4 }
 0x235   : > { %v980_v18 = vsel %vm575_vm5, 0.0, %v979_v11  ;;  %v985_v19 = vsel %vm575_vm5, %v979_v11, %v960_v54  ;;  %v854_v12 = vrot.slane %v849_v13, 4  ;;  %v984_v21 = vsel %vm575_vm5, 0.0, %v983_v36 }
 0x236   : > { %v989_v22 = vperm.slane %v985_v19, %v1957_v8  ;;  %v853_v24 = vperm.slane %v845_v16, %v1962_v23  ;;  %v990_v25 = vrot.slane %v980_v18, 4  ;;  %v996_v26 = vsel %vm575_vm5, %v983_v36, %v972_v59 }
 0x237   : > { %v1001_v27 = vrot.slane %v984_v21, 4  ;;  %v855_v28 = vsel %vm575_vm5, %v854_v12, %v837_v0  ;;  %v860_v32 = vrot.slane %v841_v14, 4  ;;  %v857_v33 = vsel %vm575_vm5, %v849_v13, %v856_v63 }
 0x238   : > { %v862_v31 = vpack.c.bf16 %v855_v28, %v855_v28  ;;  %v631_v34 = vsel %vm575_vm5, %v2018_v30, %v2016_v29  ;;  %v863_v37 = vpack.c.bf16 %v857_v33, %v857_v33  ;;  %v637_v40 = vsel %vm575_vm5, %v636_v48, %v624_v47 }
 0x239   : > { %v1002_v35 = vsel %vm575_vm5, %v1001_v27, %v982_v20  ;;  %v635_v38 = vperm.slane %v631_v34, %v1957_v8  ;;  %v858_v42 = vrot.slane %v853_v24, 4  ;;  %v861_v43 = vsel %vm575_vm5, %v853_v24, %v860_v32 }
 0x23a   : > { %v1048_v41 = vsel %vm1043_vm6, %v862_v31, 0  ;;  %v641_v44 = vperm.slane %v637_v40, %v1957_v8  ;;  %v865_v45 = vpack.c.bf16 %v861_v43, %v861_v43  ;;  %v1067_v46 = vsel %vm1043_vm6, %v863_v37, 0 }
 0x23b   : > { %1057 = vmatpush.bf16.xpose.msra.mxu3 %v1048_v41  ;;  %v655_v49 = vrot.slane %v635_v38, 4  ;;  %v665_v29 = vrot.slane %v652_v9, 4  ;;  %v1000_v30 = vperm.slane %v996_v26, %v1957_v8  ;;  %v1006_v50 = vperm.slane %v1002_v35, %v1957_v8 }
 0x23c   : > { %v653_v51 = vrot.slane %v641_v44, 4  ;;  %v991_v47 = vsel %vm575_vm5, %v990_v25, %v978_v17  ;;  %v1105_v48 = vsel %vm1043_vm6, %v865_v45, 0  ;;  %v668_v54 = vsel %vm575_vm5, %v652_v9, %v667_v10 }
 0x23d   : > { %v666_v52 = vsel %vm575_vm5, %v665_v29, %v2036_v58  ;;  %v656_v53 = vsel %vm575_vm5, %v641_v44, %v655_v49  ;;  %1114 = vmatpush.bf16.xpose.msrb.mxu0 %v1105_v48  ;;  %v859_v61 = vsel %vm575_vm5, %v858_v42, %v841_v14  ;;  %v995_v0 = vperm.slane %v991_v47, %v1957_v8 }
 0x23e   : > { %v654_v57 = vsel %vm575_vm5, %v653_v51, %v635_v38  ;;  %v672_v59 = vperm.slane %v666_v52, %v1962_v23  ;;  %v664_v60 = vperm.slane %v656_v53, %v1962_v23  ;;  %v1009_v2 = vrot.slane %v989_v22, 4 }
 0x23f   : > { %v660_v62 = vperm.slane %v654_v57, %v1962_v23  ;;  %v676_v58 = vperm.slane %v668_v54, %v1962_v23  ;;  %v1021_v56 = vrot.slane %v1000_v30, 4  ;;  %v864_v4 = vpack.c.bf16 %v859_v61, %v859_v61 }
 0x240   : > { %v677_v3 = vrot.slane %v672_v59, 4  ;;  %v683_v55 = vrot.slane %v664_v60, 4  ;;  %v1010_v5 = vsel %vm575_vm5, %v995_v0, %v1009_v2  ;;  %v1007_v6 = vrot.slane %v995_v0, 4 }
 0x241   : > { %v1018_v9 = vperm.slane %v1010_v5, %v1962_v23  ;;  %v1022_v10 = vsel %vm575_vm5, %v1006_v50, %v1021_v56  ;;  %v1019_v63 = vrot.slane %v1006_v50, 4  ;;  %v1086_v17 = vsel %vm1043_vm6, %v864_v4, 0 }
 0x242   : > { %v678_v7 = vsel %vm575_vm5, %v677_v3, %v660_v62  ;;  %v684_v39 = vsel %vm575_vm5, %v676_v58, %v683_v55  ;;  %v1008_v13 = vsel %vm575_vm5, %v1007_v6, %v989_v22  ;;  %v1030_v36 = vperm.slane %v1022_v10, %v1962_v23 }
 0x243   : > { %1076 = vmatpush.bf16.xpose.msrb.mxu3 %v1067_v46  ;;  %v685_v11 = vpack.c.bf16 %v678_v7, %v678_v7  ;;  %v688_v8 = vpack.c.bf16 %v684_v39, %v684_v39  ;;  %v1037_v14 = vrot.slane %v1018_v9, 4  ;;  %v1014_v16 = vperm.slane %v1008_v13, %v1962_v23 }
 0x244   : > { %v1020_v19 = vsel %vm575_vm5, %v1019_v63, %v1000_v30  ;;  %v679_v27 = vrot.slane %v660_v62, 4  ;;  %v1035_v35 = vrot.slane %v1030_v36, 4  ;;  %v681_v37 = vrot.slane %v676_v58, 4  ;;  %v1723_v63 = vld [vmem:[%s2217_s6 + $0x8] sm:$0xff] }
 0x245   : > { %1653 = vmatmul.msk.bf16.vlgmr.msra.gmra.mxu3 %vm1043_vm6, %v685_v11  ;;  %1656 = vmatmul.msk.bf16.vlgmr.msrb.gmra.mxu0 %vm1043_vm6, %v688_v8  ;;  %v1038_v18 = vsel %vm575_vm5, %v1030_v36, %v1037_v14  ;;  %v1033_v12 = vrot.slane %v1014_v16, 4  ;;  %v1026_v21 = vperm.slane %v1020_v19, %v1962_v23 }
 0x246   : > { %v1042_v20 = vpack.c.bf16 %v1038_v18, %v1038_v18  ;;  %v680_v32 = vsel %vm575_vm5, %v672_v59, %v679_v27  ;;  %v1036_v38 = vsel %vm575_vm5, %v1035_v35, %v1018_v9  ;;  %v682_v40 = vsel %vm575_vm5, %v681_v37, %v664_v60  ;;  %v1724_v18 = vld [vmem:[%s2217_s6 + $0x10] sm:$0xff] }
 0x247   : > { %v1034_v24 = vsel %vm575_vm5, %v1026_v21, %v1033_v12  ;;  %v1031_v25 = vrot.slane %v1026_v21, 4  ;;  %v686_v34 = vpack.c.bf16 %v680_v32, %v680_v32  ;;  %v1041_v41 = vpack.c.bf16 %v1036_v38, %v1036_v38 }
 0x248   : > { %v1223_v22 = vsel %vm1164_vm7, %v1042_v20, 0  ;;  %v1040_v26 = vpack.c.bf16 %v1034_v24, %v1034_v24  ;;  %v687_v42 = vpack.c.bf16 %v682_v40, %v682_v40 }
 0x249   : > { %1232 = vmatpush.bf16.msra.mxu0 %v1223_v22  ;;  %v1032_v31 = vsel %vm575_vm5, %v1031_v25, %v1014_v16  ;;  %v1204_v43 = vsel %vm1164_vm7, %v1041_v41, 0  ;;  %v1722_v16 = vld [vmem:[%s2217_s6] sm:$0xff] }
 0x24a   : > { %v1185_v28 = vsel %vm1164_vm7, %v1040_v26, 0  ;;  %v1039_v33 = vpack.c.bf16 %v1032_v31, %v1032_v31  ;;  %1274 = vmatpush.bf16.msrb.mxu1 %v1722_v16 }
 0x24b   : > { %1095 = vmatpush.bf16.xpose.msra.mxu3 %v1086_v17  ;;  %1194 = vmatpush.bf16.msrb.mxu2 %v1185_v28  ;;  %v1725_v17 = vld [vmem:[%s2217_s6 + $0x18] sm:$0xff] }
 0x24c   : > { %v1166_v23 = vsel %vm1164_vm7, %v1039_v33, 0 }
 0x24d   : > { %1340 = vmatpush.bf16.msrb.mxu0 %v1725_v17 }
 0x24f   : > { %1296 = vmatpush.bf16.msra.mxu2 %v1723_v63 }
 0x255   : > { %1654 = vmatmul.msk.bf16.vlgmr.msrb.gmra.mxu3 %vm1043_vm6, %v686_v34 }
 0x256   : > { %1175 = vmatpush.bf16.msrb.mxu3 %v1166_v23 }
 0x265   : > { %1655 = vmatmul.msk.bf16.vlgmr.msra.gmra.mxu3 %vm1043_vm6, %v687_v42 }
 0x266   : > { %1213 = vmatpush.bf16.msra.mxu3 %v1204_v43 }
 0x2c2   : > { %v1116_v44 = vpop.f32.mrf.mxu0 }
 0x2c3   : > { %v1130_v47 = vsel %vm1120_vm8, %v1116_v44, -inf }
 0x2c8   : > { %v1059_v45 = vpop.f32.mrf.mxu3 }
 0x2c9   : > { %v1121_v46 = vsel %vm1120_vm8, %v1059_v45, -inf }
 0x2ca   : > { %1122 = vmax.xlane.f32.xlu1 %v1121_v46  ;;  %v1118_v49 = vpop.f32.mrf.mxu0 }
 0x2d0   : > { %v1061_v29 = vpop.f32.mrf.mxu3 }
 0x2d8   : > { %v1078_v30 = vpop.f32.mrf.mxu3 }
 0x2d9   : > { %v1124_v50 = vsel %vm1120_vm8, %v1078_v30, -inf }
 0x2da   : > { %1125 = vmax.xlane.f32.xlu2 %v1124_v50 }
 0x2e0   : > { %v1080_v51 = vpop.f32.mrf.mxu3 }
 0x2e2   : > { %1131 = vmax.xlane.f32.xlu2 %v1130_v47 }
 0x2e8   : > { %v1097_v48 = vpop.f32.mrf.mxu3 }
 0x2e9   : > { %v1127_v52 = vsel %vm1120_vm8, %v1097_v48, -inf }
 0x2ea   : > { %1128 = vmax.xlane.f32.xlu0 %v1127_v52 }
 0x2f0   : > { %v1099_v53 = vpop.f32.mrf.mxu3 }
 0x33d   : > { %v1123_v54 = vpop.xlane.xlu1 %1122 }
 0x33e   : > { %v1133_v57 = vsub.f32 %v1059_v45, %v1123_v54 }
 0x340   : > { %v1137_v59 = vmul.f32 1.442695, %v1133_v57 }
 0x342   : > { %1757 = vpow2.f32 %v1137_v59 }
 0x348   : > { %v1758_v60 = vpop.eup %1757 }
 0x349   : > { %v1157_v61 = vpack.c.bf16 %v1758_v60, %v1758_v60  ;;  %v1145_v62 = vsel %vm1120_vm8, %v1758_v60, 0.0 }
 0x34a   : > { %1146 = vadd.xlane.f32.xlu2 %v1145_v62 }
 0x34b   : > { %1657 = vmatmul.msk.bf16.vlgmr.msrb.gmra.mxu3 %vm1120_vm8, %v1157_v61  ;;  %v1748_v61 = vld [vmem:[%s2218_s7] ss:$0 sm:$0xff] }
 0x34c   : > { %1318 = vmatpush.bf16.msrb.mxu3 %v1724_v18 }
 0x34d   : > { %v1126_v0 = vpop.xlane.xlu2 %1125 }
 0x34e   : > { %v1134_v2 = vsub.f32 %v1078_v30, %v1126_v0 }
 0x350   : > { %v1139_v3 = vmul.f32 1.442695, %v1134_v2 }
 0x352   : > { %1759 = vpow2.f32 %v1139_v3 }
 0x355   : > { %v1132_v58 = vpop.xlane.xlu2 %1131 }
 0x356   : > { %v1136_v55 = vsub.f32 %v1116_v44, %v1132_v58  ;;  %v1729_v58 = vld [vmem:[%s2221_s10 + $0x18] sm:$0xff] }
 0x358   : > { %v1760_v56 = vpop.eup %1759  ;;  %v1143_v4 = vmul.f32 1.442695, %v1136_v55  ;;  %v1437_v55 = vsel %vm468_vm0, %v1729_v58, 0 }
 0x359   : > { %v1148_v5 = vsel %vm1120_vm8, %v1760_v56, 0.0  ;;  %v1158_v6 = vpack.c.bf16 %v1760_v56, %v1760_v56  ;;  %1443 = vmatpush.bf16.xpose.msra.mxu1 %v1437_v55 }
 0x35a   : > { %1761 = vpow2.f32 %v1143_v4  ;;  %1149 = vadd.xlane.f32.xlu1 %v1148_v5 }
 0x35b   : > { %1658 = vmatmul.msk.bf16.vlgmr.msrb.gmra.mxu2 %vm1120_vm8, %v1158_v6 }
 0x35d   : > { %v1129_v7 = vpop.xlane.xlu0 %1128 }
 0x35e   : > { %v1135_v39 = vsub.f32 %v1097_v48, %v1129_v7  ;;  %v1728_v7 = vld [vmem:[%s2221_s10 + $0x10] sm:$0xff] }
 0x360   : > { %v1762_v9 = vpop.eup %1761  ;;  %v1141_v10 = vmul.f32 1.442695, %v1135_v39  ;;  %v1434_v39 = vsel %vm468_vm0, %v1728_v7, 0 }
 0x361   : > { %v1160_v11 = vpack.c.bf16 %v1762_v9, %v1762_v9  ;;  %v1154_v8 = vsel %vm1120_vm8, %v1762_v9, 0.0  ;;  %1444 = vmatpush.bf16.xpose.msra.mxu1 %v1434_v39  ;;  %v1727_v9 = vld [vmem:[%s2221_s10 + $0x8] sm:$0xff] }
 0x362   : > { %1763 = vpow2.f32 %v1141_v10  ;;  %1155 = vadd.xlane.f32.xlu1 %v1154_v8  ;;  %v1431_v10 = vsel %vm468_vm0, %v1727_v9, 0 }
 0x363   : > { %1660 = vmatmul.msk.bf16.vlgmr.msra.gmra.mxu0 %vm1120_vm8, %v1160_v11  ;;  %v1726_v11 = vld [vmem:[%s2221_s10] sm:$0xff] }
 0x364   : > { %v1428_v8 = vsel %vm468_vm0, %v1726_v11, 0 }
 0x368   : > { %v1764_v13 = vpop.eup %1763 }
 0x369   : > { %v1159_v36 = vpack.c.bf16 %v1764_v13, %v1764_v13  ;;  %v1151_v14 = vsel %vm1120_vm8, %v1764_v13, 0.0  ;;  %1445 = vmatpush.bf16.xpose.msra.mxu1 %v1431_v10 }
 0x36a   : > { %1152 = vadd.xlane.f32.xlu0 %v1151_v14 }
 0x36b   : > { %1659 = vmatmul.msk.bf16.vlgmr.msra.gmra.mxu3 %vm1120_vm8, %v1159_v36 }
 0x371   : > { %1446 = vmatpush.bf16.xpose.msra.mxu1 %v1428_v8 }
 0x3bd   : > { %v1147_v19 = vpop.xlane.xlu2 %1146 }
 0x3be   : > { %1765 = vrcp.f32 %v1147_v19 }
 0x3c4   : > { %v1766_v20 = vpop.eup %1765 }
 0x3cd   : > { %v1150_v12 = vpop.xlane.xlu1 %1149 }
 0x3ce   : > { %v1177_v21 = vpop.f32.mrf.mxu3  ;;  %1767 = vrcp.f32 %v1150_v12 }
 0x3cf   : > { %v1242_v22 = vmul.f32 %v1766_v20, %v1177_v21  ;;  %v1749_v20 = vld [vmem:[%s2219_s8] ss:$0 sm:$0xff] }
 0x3d1   : > { %v1246_v24 = vpack.c.bf16 %v1242_v22, %v1242_v22 }
 0x3d3   : > { %1665 = vmatmul.msk.bf16.vlgmr.msrb.gmra.mxu1 %vm1043_vm6, %v1246_v24 }
 0x3d4   : > { %v1768_v27 = vpop.eup %1767 }
 0x3d5   : > { %v1156_v26 = vpop.xlane.xlu1 %1155 }
 0x3d6   : > { %v1179_v25 = vpop.f32.mrf.mxu3  ;;  %1769 = vrcp.f32 %v1156_v26 }
 0x3dc   : > { %v1770_v32 = vpop.eup %1769 }
 0x3dd   : > { %v1153_v37 = vpop.xlane.xlu0 %1152 }
 0x3de   : > { %v1196_v28 = vpop.f32.mrf.mxu2  ;;  %1771 = vrcp.f32 %v1153_v37 }
 0x3df   : > { %v1243_v31 = vmul.f32 %v1768_v27, %v1196_v28  ;;  %v1751_v27 = vld [vmem:[%s2222_s11] ss:$0 sm:$0xff] }
 0x3e0   : > { %v1234_v33 = vpop.f32.mrf.mxu0 }
 0x3e1   : > { %v1247_v34 = vpack.c.bf16 %v1243_v31, %v1243_v31  ;;  %v1245_v23 = vmul.f32 %v1770_v32, %v1234_v33 }
 0x3e3   : > { %v1249_v35 = vpack.c.bf16 %v1245_v23, %v1245_v23  ;;  %1670 = vmatmul.msk.bf16.vlgmr.msra.gmra.mxu2 %vm1043_vm6, %v1247_v34 }
 0x3e4   : > { %v1772_v41 = vpop.eup %1771 }
 0x3e5   : > { %1680 = vmatmul.msk.bf16.vlgmr.msrb.gmra.mxu0 %vm1043_vm6, %v1249_v35 }
 0x3e6   : > { %v1198_v38 = vpop.f32.mrf.mxu2 }
 0x3e8   : > { %v1236_v40 = vpop.f32.mrf.mxu0 }
 0x3ee   : > { %v1215_v42 = vpop.f32.mrf.mxu3 }
 0x3ef   : > { %v1244_v43 = vmul.f32 %v1772_v41, %v1215_v42 }
 0x3f1   : > { %v1248_v44 = vpack.c.bf16 %v1244_v43, %v1244_v43  ;;  %v1731_v43 = vld [vmem:[%s2223_s12 + $0x8] sm:$0xff] }
 0x3f3   : > { %1675 = vmatmul.msk.bf16.vlgmr.msrb.gmra.mxu3 %vm1043_vm6, %v1248_v44 }
 0x3f6   : > { %v1217_v45 = vpop.f32.mrf.mxu3 }
 0x3f7   : > { %v1523_v45 = vsel %vm1515_vm12, %v1731_v43, 0 }
 0x3f8   : > { %1531 = vmatpush.bf16.xpose.msrb.mxu2 %v1523_v45 }
 0x450   : > { %v1276_v46 = vpop.f32.mrf.mxu1 }
 0x451   : > { %v1346_v48 = vsel %vm468_vm0, %v1276_v46, 0.0 }
 0x458   : > { %v1278_v49 = vpop.f32.mrf.mxu1 }
 0x462   : > { %v1342_v29 = vpop.f32.mrf.mxu0 }
 0x463   : > { %v1351_v59 = vsel %vm468_vm0, %v1342_v29, 0.0 }
 0x466   : > { %v1298_v30 = vpop.f32.mrf.mxu2 }
 0x467   : > { %v1347_v47 = vsel %vm468_vm0, %v1298_v30, 0.0 }
 0x468   : > { %v1348_v52 = vadd.f32 %v1347_v47, %v1346_v48 }
 0x46a   : > { %v1344_v50 = vpop.f32.mrf.mxu0 }
 0x46e   : > { %v1300_v51 = vpop.f32.mrf.mxu2 }
 0x46f   : > { %v1730_v51 = vld [vmem:[%s2223_s12] sm:$0xff] }
 0x470   : > { %v1520_v48 = vsel %vm1515_vm12, %v1730_v51, 0 }
 0x471   : > { %1532 = vmatpush.bf16.xpose.msrb.mxu2 %v1520_v48 }
 0x476   : > { %v1320_v53 = vpop.f32.mrf.mxu3 }
 0x477   : > { %v1349_v54 = vsel %vm468_vm0, %v1320_v53, 0.0 }
 0x478   : > { %v1350_v57 = vadd.f32 %v1349_v54, %v1348_v52 }
 0x47a   : > { %v1352_v60 = vadd.f32 %v1351_v59, %v1350_v57 }
 0x47c   : > { %v1353_v62 = vadd.f32 %v1352_v60, %v1882_v1 }
 0x47e   : > { %v1322_v0 = vpop.f32.mrf.mxu3  ;;  %v2156_v2 = vadd.f32 %v1748_v61, %v1353_v62 }
 0x480   : > { %v1361_v3 = vsel %vm468_vm0, %v2156_v2, 0.0 }
 0x481   : > { %1362 = vadd.xlane.f32.xlu0 %v1361_v3 }
 0x4f4   : > { %v1363_v56 = vpop.xlane.xlu0 %1362 }
 0x4f5   : > { %v1364_v4 = vmul.f32 %v1363_v56, %v1898_v15 }
 0x4f7   : > { %v1365_v5 = vsub.f32 %v2156_v2, %v1364_v4 }
 0x4f9   : > { %v1366_v1 = vmul.f32 %v1365_v5, %v1365_v5 }
 0x4fb   : > { %v1367_v6 = vsel %vm468_vm0, %v1366_v1, 0.0 }
 0x4fc   : > { %1368 = vadd.xlane.f32.xlu2 %v1367_v6 }
 0x56f   : > { %v1369_v13 = vpop.xlane.xlu2 %1368 }
 0x570   : > { %v1370_v36 = vmul.f32 %v1369_v13, %v1898_v15  ;;  %v1750_v15 = vld [vmem:[%s2220_s9] ss:$0 sm:$0xff] }
 0x572   : > { %v1371_v14 = vadd.f32 1e-05, %v1370_v36  ;;  %v1752_v36 = vld [vmem:[%s2224_s13] ss:$0 sm:$0xff] }
 0x574   : > { %1773 = vrsqrt.f32 %v1371_v14  ;;  %vm1378_vm10 = vweird.f32 %v1371_v14 }
 0x57a   : > { %v1774_v16 = vpop.eup %1773 }
 0x57b   : > { %v1373_v63 = vmul.f32 %v1774_v16, %v1371_v14  ;;  %vm1379_vm9 = vweird.f32 %v1774_v16 }
 0x57c   : > { %vm1380_vm11 = vmor %vm1378_vm10, %vm1379_vm9 }
 0x57d   : > { %v1374_v17 = vmul.f32 %v1774_v16, %v1373_v63 }
 0x57f   : > { %v1375_v18 = vmul.f32 0.5, %v1374_v17 }
 0x581   : > { %v1376_v19 = vsub.f32 1.5, %v1375_v18 }
 0x583   : > { %v1377_v12 = vmul.f32 %v1774_v16, %v1376_v19 }
 0x585   : > { %v1381_v21 = vsel %vm1380_vm11, %v1774_v16, %v1377_v12 }
 0x586   : > { %v1382_v22 = vmul.f32 %v1381_v21, %v1365_v5 }
 0x588   : > { %v1386_v24 = vmul.f32 %v1749_v20, %v1382_v22 }
 0x58a   : > { %v1390_v25 = vadd.f32 %v1750_v15, %v1386_v24 }
 0x58c   : > { %v1391_v26 = vpack.c.bf16 %v1390_v25, %v1390_v25 }
 0x58e   : > { %1697 = vmatmul.msk.bf16.vlgmr.msra.gmra.mxu1 %vm468_vm0, %v1391_v26 }
 0x60b   : > { %v1448_v28 = vpop.f32.mrf.mxu1 }
 0x60c   : > { %v1449_v31 = vadd.f32 %v1751_v27, %v1448_v28 }
 0x60e   : > { %v1453_v32 = vmul.f32 0.70710677, %v1449_v31  ;;  %v1452_v10 = vmul.f32 0.5, %v1449_v31 }
 0x610   : > { %v1454_v33 = vmul.f32 %v1453_v32, %v1453_v32 }
 0x612   : > { %v1455_v34 = vmin.f32 %v1454_v33, 16.0 }
 0x613   : > { %v1450_v23 = vpop.f32.mrf.mxu1 }
 0x614   : > { %v1456_v35 = vmul.f32 2.1237322e-06, %v1455_v34  ;;  %v1467_v37 = vmul.f32 3.8918573e-05, %v1455_v34 }
 0x616   : > { %v1457_v38 = vadd.f32 0.00028619796, %v1456_v35  ;;  %v1468_v40 = vadd.f32 0.001143296, %v1467_v37 }
 0x618   : > { %v1458_v41 = vmul.f32 %v1457_v38, %v1455_v34  ;;  %v1469_v42 = vmul.f32 %v1468_v40, %v1455_v34 }
 0x61a   : > { %v1470_v44 = vadd.f32 0.014752088, %v1469_v42  ;;  %v1459_v46 = vadd.f32 0.0036580483, %v1458_v41 }
 0x61c   : > { %v1471_v49 = vmul.f32 %v1470_v44, %v1455_v34  ;;  %v1460_v30 = vmul.f32 %v1459_v46, %v1455_v34 }
 0x61e   : > { %v1472_v29 = vadd.f32 0.112945676, %v1471_v49  ;;  %v1461_v52 = vadd.f32 0.05243302, %v1460_v30 }
 0x620   : > { %v1473_v50 = vmul.f32 %v1472_v29, %v1455_v34  ;;  %v1462_v57 = vmul.f32 %v1461_v52, %v1455_v34 }
 0x622   : > { %v1474_v47 = vadd.f32 0.4994258, %v1473_v50  ;;  %v1463_v59 = vadd.f32 0.18741608, %v1462_v57 }
 0x624   : > { %v1475_v53 = vmul.f32 %v1474_v47, %v1455_v34  ;;  %v1464_v61 = vmul.f32 %v1463_v59, %v1455_v34 }
 0x626   : > { %v1476_v54 = vadd.f32 1.0, %v1475_v53  ;;  %v1465_v58 = vadd.f32 1.1283791, %v1464_v61 }
 0x628   : > { %1775 = vrcp.f32 %v1476_v54  ;;  %v1488_v3 = vand.u32 2147483648, %v1476_v54  ;;  %v1486_v56 = vand.u32 2147483647, %v1476_v54  ;;  %vm1482_vm14 = vweird.f32 %v1476_v54 }
 0x629   : > { %v1466_v1 = vmul.f32 %v1465_v58, %v1453_v32 }
 0x62a   : > { %v1489_v5 = vor.u32 1.1754944e-38, %v1488_v3  ;;  %vm1487_vm0 = vcmp.eq.f32.partialorder %v1486_v56, 8.507059e+37 }
 0x62e   : > { %v1776_v60 = vpop.eup %1775 }
 0x62f   : > { %v1478_v62 = vmul.f32 %v1776_v60, %v1476_v54  ;;  %vm1483_vm13 = vweird.f32 %v1776_v60 }
 0x630   : > { %vm1484_vm15 = vmor %vm1482_vm14, %vm1483_vm13 }
 0x631   : > { %v1479_v0 = vsub.f32 1.0, %v1478_v62 }
 0x633   : > { %v1480_v55 = vmul.f32 %v1776_v60, %v1479_v0 }
 0x635   : > { %v1481_v4 = vadd.f32 %v1776_v60, %v1480_v55 }
 0x637   : > { %v1485_v6 = vsel %vm1484_vm15, %v1776_v60, %v1481_v4 }
 0x638   : > { %v1490_v7 = vsel %vm1487_vm0, %v1489_v5, %v1485_v6 }
 0x639   : > { %v1491_v39 = vmul.f32 %v1490_v7, %v1466_v1 }
 0x63b   : > { %v1698_v9 = vclamps-f32 %v1491_v39, 1.0 }
 0x63d   : > { %v1494_v11 = vadd.f32 1.0, %v1698_v9 }
 0x63f   : > { %v1495_v8 = vmul.f32 %v1494_v11, %v1452_v10 }
 0x641   : > { %v1496_v13 = vpack.c.bf16 %v1495_v8, %v1495_v8 }
 0x643   : > { %1707 = vmatmul.msk.bf16.vlgmr.msrb.gmra.mxu2 %vm1515_vm12, %v1496_v13 }
 0x6c6   : > { %v1534_v14 = vpop.f32.mrf.mxu2 }
 0x6c7   : > { %v1535_v16 = vadd.f32 %v1752_v36, %v1534_v14 }
 0x6c9   : > { %v1538_v63 = vadd.f32 %v1535_v16, %v2156_v2 }
 0x6cb   : > { %v1539_v17 = vpack.c.bf16 %v1538_v63, %v1538_v63 }
 0x6cd   : > { %1541 = vst.msk [vmem:[%s462_s17] sm:$0xf] %vm1540_vm1, %v1539_v17 }
 0x6ce   : > { %v1536_v18 = vpop.f32.mrf.mxu2 }
 0x6cf PF: > { %s24_s29 = sadd.s32 1, %s1783_s29  }
 0x6d0   : > { %p21_p4 = scmp.ge.s32.totalorder %s24_s29, 4  }
 0x6d2   :  { %23 = sbr.rel (!%p21_p4) target bundleno = 1 (0x1), region = 106 }

</bundles_post_ra>
